<compile_context>
chip_gen: v6e
topology: v6e:2x2x1
jax: 0.10.0
libtpu: 0.0.40
codegen_flags: <defaults>
</compile_context>

<pallas_src>
import jax
import jax.numpy as jnp
from jax.experimental import pallas as pl
from jax.experimental.pallas import tpu as pltpu

IN_DIM = 28 * 28     # 784
IN_PAD = 896         # 7 * 128 — lane-aligned padding of the feature dim
H1, H2, Z = 256, 64, 16


def _round_up(x, m):
    return (x + m - 1) // m * m


def _vae_kernel(x_ref, eps_ref,
                w1_ref, b1_ref, w2_ref, b2_ref,
                w3_ref, b3_ref,                      # fused fc31 || fc32
                w4_ref, b4_ref, w5_ref, b5_ref,
                w6_ref, b6_ref,
                decode_ref, mulogvar_ref):
    # --- encoder (bf16 MXU matmuls, f32 accumulation) ---
    x = x_ref[...]                                   # bf16 [TB, 896]
    h1 = jnp.maximum(
        jnp.dot(x, w1_ref[...], preferred_element_type=jnp.float32) + b1_ref[...], 0.0)
    h2 = jnp.maximum(
        jnp.dot(h1.astype(jnp.bfloat16), w2_ref[...],
                preferred_element_type=jnp.float32) + b2_ref[...], 0.0)
    # fused mu||logvar projection: single lane-dense (TB, 32) block
    mulogvar = jnp.dot(h2.astype(jnp.bfloat16), w3_ref[...],
                       preferred_element_type=jnp.float32) + b3_ref[...]
    mu = mulogvar[:, :Z]
    logvar = mulogvar[:, Z:]

    # --- reparameterization: s = exp(0.5*logvar) * eps + mu ---
    std = jnp.exp(0.5 * logvar)
    s = std * eps_ref[...] + mu

    # --- decoder ---
    h4 = jnp.maximum(
        jnp.dot(s.astype(jnp.bfloat16), w4_ref[...],
                preferred_element_type=jnp.float32) + b4_ref[...], 0.0)
    h5 = jnp.maximum(
        jnp.dot(h4.astype(jnp.bfloat16), w5_ref[...],
                preferred_element_type=jnp.float32) + b5_ref[...], 0.0)
    logits = jnp.dot(h5.astype(jnp.bfloat16), w6_ref[...],
                     preferred_element_type=jnp.float32) + b6_ref[...]
    # sigmoid via EUP approximate reciprocal (free VLIW slot vs. VPU divide)
    decode = pl.reciprocal(1.0 + jnp.exp(-logits), approx=True)

    decode_ref[...] = decode
    mulogvar_ref[...] = mulogvar


def init_params(key):
    """nn.Linear-style init (uniform ±1/sqrt(fan_in)); weights as [in_dim, out_dim]."""
    dims = {
        "fc1": (IN_DIM, H1), "fc2": (H1, H2),
        "fc31": (H2, Z), "fc32": (H2, Z),
        "fc4": (Z, H2), "fc5": (H2, H1), "fc6": (H1, IN_DIM),
    }
    params = {}
    for name, (din, dout) in dims.items():
        key, kw, kb = jax.random.split(key, 3)
        bound = 1.0 / jnp.sqrt(jnp.float32(din))
        w = jax.random.uniform(kw, (din, dout), jnp.float32, -bound, bound)
        b = jax.random.uniform(kb, (1, dout), jnp.float32, -bound, bound)
        params[name] = (w, b)
    return params


def prepare_params(params):
    """Fuse fc31/fc32, zero-pad the 784 dims to 896, cast weights to bf16.
    Biases stay f32. Returns the flat list the kernel consumes."""
    w1, b1 = params["fc1"]
    w2, b2 = params["fc2"]
    w31, b31 = params["fc31"]
    w32, b32 = params["fc32"]
    w4, b4 = params["fc4"]
    w5, b5 = params["fc5"]
    w6, b6 = params["fc6"]

    w1p = jnp.pad(w1, ((0, IN_PAD - IN_DIM), (0, 0)))          # [896, 256]
    w6p = jnp.pad(w6, ((0, 0), (0, IN_PAD - IN_DIM)))          # [256, 896]
    b6p = jnp.pad(b6, ((0, 0), (0, IN_PAD - IN_DIM)))          # [1, 896]
    w3 = jnp.concatenate([w31, w32], axis=1)                   # [64, 32]
    b3 = jnp.concatenate([b31, b32], axis=1)                   # [1, 32]

    bf = lambda w: w.astype(jnp.bfloat16)
    return [bf(w1p), b1, bf(w2), b2, bf(w3), b3,
            bf(w4), b4, bf(w5), b5, bf(w6p), b6p]


def vae_forward(x, eps, flat_params, *, tb=256):
    """x: [B, 784] f32, eps: [B, 16] f32 (the randn_like noise).
    Returns (decode [B,784], mu [B,16], logvar [B,16])."""
    B = x.shape[0]
    TB = min(tb, _round_up(B, 8))            # batch tile (sublane-aligned)
    B_pad = _round_up(B, TB)
    grid = (B_pad // TB,)

    # zero-pad batch and feature dims; inputs are cast to bf16 (halves HBM bytes)
    x_pad = jnp.pad(x.astype(jnp.bfloat16),
                    ((0, B_pad - B), (0, IN_PAD - IN_DIM)))
    eps_pad = jnp.pad(eps.astype(jnp.float32), ((0, B_pad - B), (0, 0)))

    in_specs = [
        pl.BlockSpec((TB, IN_PAD), lambda i: (i, 0)),   # x tile
        pl.BlockSpec((TB, Z), lambda i: (i, 0)),        # eps tile
    ]
    # weights/biases: full arrays, constant block index -> VMEM-resident across tiles
    in_specs += [pl.BlockSpec(p.shape, lambda i: (0, 0)) for p in flat_params]

    out_specs = (
        pl.BlockSpec((TB, IN_PAD), lambda i: (i, 0)),   # decode (padded)
        pl.BlockSpec((TB, 2 * Z), lambda i: (i, 0)),    # mu || logvar
    )
    out_shape = (
        jax.ShapeDtypeStruct((B_pad, IN_PAD), jnp.float32),
        jax.ShapeDtypeStruct((B_pad, 2 * Z), jnp.float32),
    )

    decode_pad, mulogvar = pl.pallas_call(
        _vae_kernel,
        out_shape=out_shape,
        grid_spec=pltpu.PrefetchScalarGridSpec(
            num_scalar_prefetch=0,
            grid=grid,
            in_specs=in_specs,
            out_specs=out_specs,
        ),
        compiler_params=pltpu.CompilerParams(
            dimension_semantics=("parallel",),   # megacore batch sharding on v7x
        ),
    )(x_pad, eps_pad, *flat_params)

    decode = decode_pad[:B, :IN_DIM]
    mu = mulogvar[:B, :Z]
    logvar = mulogvar[:B, Z:]
    return decode, mu, logvar


def vae_forward_ref(x, eps, flat_params):
    """Pure-JAX reference with the same bf16-weight / f32-accumulate semantics."""
    (w1, b1, w2, b2, w3, b3, w4, b4, w5, b5, w6, b6) = flat_params
    xb = jnp.pad(x, ((0, 0), (0, IN_PAD - IN_DIM)))

    def lin(h, w, b):
        return jnp.dot(h.astype(jnp.bfloat16), w,
                       preferred_element_type=jnp.float32) + b

    h1 = jax.nn.relu(lin(xb, w1, b1))
    h2 = jax.nn.relu(lin(h1, w2, b2))
    mulogvar = lin(h2, w3, b3)
    mu, logvar = mulogvar[:, :Z], mulogvar[:, Z:]
    s = jnp.exp(0.5 * logvar) * eps + mu
    h4 = jax.nn.relu(lin(s, w4, b4))
    h5 = jax.nn.relu(lin(h4, w5, b5))
    decode = jax.nn.sigmoid(lin(h5, w6, b6))
    return decode[:, :IN_DIM], mu, logvar


if __name__ == "__main__":
    key = jax.random.PRNGKey(0)
    kparam, kx, keps = jax.random.split(key, 3)

    B = 8
    params = init_params(kparam)
    flat_params = prepare_params(params)
    x = jax.random.uniform(kx, (B, IN_DIM), jnp.float32)    # MNIST-like flattened input
    eps = jax.random.normal(keps, (B, Z), jnp.float32)      # randn_like noise for sampling

    decode, mu, logvar = jax.block_until_ready(vae_forward(x, eps, flat_params))

    # correctness check against a pure-JAX reference with identical bf16 semantics
    d_ref, mu_ref, lv_ref = vae_forward_ref(x, eps, flat_params)
    assert decode.shape == (B, IN_DIM) and mu.shape == (B, Z) and logvar.shape == (B, Z)
    assert jnp.allclose(mu, mu_ref, atol=1e-3, rtol=1e-3)
    assert jnp.allclose(logvar, lv_ref, atol=1e-3, rtol=1e-3)
    assert jnp.allclose(decode, d_ref, atol=2e-3, rtol=2e-3)  # approx-reciprocal sigmoid

    print("KERNEL_OK")
</pallas_src>

<mosaic_0001>
module attributes {stable_mosaic.version = 11 : i64} {
  func.func @_vae_kernel(%arg0: i32, %arg1: memref<8x896xbf16, #tpu.memory_space<vmem>>, %arg2: memref<8x16xf32, #tpu.memory_space<vmem>>, %arg3: memref<896x256xbf16, #tpu.memory_space<vmem>>, %arg4: memref<1x256xf32, #tpu.memory_space<vmem>>, %arg5: memref<256x64xbf16, #tpu.memory_space<vmem>>, %arg6: memref<1x64xf32, #tpu.memory_space<vmem>>, %arg7: memref<64x32xbf16, #tpu.memory_space<vmem>>, %arg8: memref<1x32xf32, #tpu.memory_space<vmem>>, %arg9: memref<16x64xbf16, #tpu.memory_space<vmem>>, %arg10: memref<1x64xf32, #tpu.memory_space<vmem>>, %arg11: memref<64x256xbf16, #tpu.memory_space<vmem>>, %arg12: memref<1x256xf32, #tpu.memory_space<vmem>>, %arg13: memref<256x896xbf16, #tpu.memory_space<vmem>>, %arg14: memref<1x896xf32, #tpu.memory_space<vmem>>, %arg15: memref<8x896xf32, #tpu.memory_space<vmem>>, %arg16: memref<8x32xf32, #tpu.memory_space<vmem>>) attributes {dimension_semantics = [#tpu.dimension_semantics<parallel>], iteration_bounds = array<i64: 1>, scalar_prefetch = 0 : i64, scratch_operands = 0 : i64, tpu.core_type = #tpu.core_type<tc>, window_params = [{transform_indices = @transform_0, window_bounds = array<i64: 8, 896>}, {transform_indices = @transform_1, window_bounds = array<i64: 8, 16>}, {pipeline_mode = #tpu.pipeline_mode<synchronous>, transform_indices = @transform_2, window_bounds = array<i64: 896, 256>}, {pipeline_mode = #tpu.pipeline_mode<synchronous>, transform_indices = @transform_3, window_bounds = array<i64: 1, 256>}, {pipeline_mode = #tpu.pipeline_mode<synchronous>, transform_indices = @transform_4, window_bounds = array<i64: 256, 64>}, {pipeline_mode = #tpu.pipeline_mode<synchronous>, transform_indices = @transform_5, window_bounds = array<i64: 1, 64>}, {pipeline_mode = #tpu.pipeline_mode<synchronous>, transform_indices = @transform_6, window_bounds = array<i64: 64, 32>}, {pipeline_mode = #tpu.pipeline_mode<synchronous>, transform_indices = @transform_7, window_bounds = array<i64: 1, 32>}, {pipeline_mode = #tpu.pipeline_mode<synchronous>, transform_indices = @transform_8, window_bounds = array<i64: 16, 64>}, {pipeline_mode = #tpu.pipeline_mode<synchronous>, transform_indices = @transform_9, window_bounds = array<i64: 1, 64>}, {pipeline_mode = #tpu.pipeline_mode<synchronous>, transform_indices = @transform_10, window_bounds = array<i64: 64, 256>}, {pipeline_mode = #tpu.pipeline_mode<synchronous>, transform_indices = @transform_11, window_bounds = array<i64: 1, 256>}, {pipeline_mode = #tpu.pipeline_mode<synchronous>, transform_indices = @transform_12, window_bounds = array<i64: 256, 896>}, {pipeline_mode = #tpu.pipeline_mode<synchronous>, transform_indices = @transform_13, window_bounds = array<i64: 1, 896>}, {transform_indices = @transform_14, window_bounds = array<i64: 8, 896>}, {transform_indices = @transform_15, window_bounds = array<i64: 8, 32>}]} {
    %c0 = arith.constant 0 : index
    %c0_0 = arith.constant 0 : index
    %0 = vector.load %arg1[%c0, %c0_0] : memref<8x896xbf16, #tpu.memory_space<vmem>>, vector<8x896xbf16>
    %c0_1 = arith.constant 0 : index
    %c0_2 = arith.constant 0 : index
    %1 = vector.load %arg3[%c0_1, %c0_2] : memref<896x256xbf16, #tpu.memory_space<vmem>>, vector<896x256xbf16>
    %cst = arith.constant dense<0.000000e+00> : vector<8x256xf32>
    %2 = tpu.matmul %0, %1, %cst {dimension_numbers = #tpu.dot_dimension_numbers<[1], [0], [0], [1], [0, 0, 1, 1], [], []>} : vector<8x896xbf16>, vector<896x256xbf16>, vector<8x256xf32> -> vector<8x256xf32>
    %c0_3 = arith.constant 0 : index
    %c0_4 = arith.constant 0 : index
    %3 = vector.load %arg4[%c0_3, %c0_4] : memref<1x256xf32, #tpu.memory_space<vmem>>, vector<1x256xf32>
    %4 = vector.broadcast %3 : vector<1x256xf32> to vector<8x256xf32>
    %5 = arith.addf %2, %4 : vector<8x256xf32>
    %cst_5 = arith.constant 0.000000e+00 : f32
    %6 = vector.broadcast %cst_5 : f32 to vector<8x256xf32>
    %7 = arith.maximumf %5, %6 : vector<8x256xf32>
    %8 = arith.truncf %7 : vector<8x256xf32> to vector<8x256xbf16>
    %c0_6 = arith.constant 0 : index
    %c0_7 = arith.constant 0 : index
    %9 = vector.load %arg5[%c0_6, %c0_7] : memref<256x64xbf16, #tpu.memory_space<vmem>>, vector<256x64xbf16>
    %cst_8 = arith.constant dense<0.000000e+00> : vector<8x64xf32>
    %10 = tpu.matmul %8, %9, %cst_8 {dimension_numbers = #tpu.dot_dimension_numbers<[1], [0], [0], [1], [0, 0, 1, 1], [], []>} : vector<8x256xbf16>, vector<256x64xbf16>, vector<8x64xf32> -> vector<8x64xf32>
    %c0_9 = arith.constant 0 : index
    %c0_10 = arith.constant 0 : index
    %11 = vector.load %arg6[%c0_9, %c0_10] : memref<1x64xf32, #tpu.memory_space<vmem>>, vector<1x64xf32>
    %12 = vector.broadcast %11 : vector<1x64xf32> to vector<8x64xf32>
    %13 = arith.addf %10, %12 : vector<8x64xf32>
    %cst_11 = arith.constant 0.000000e+00 : f32
    %14 = vector.broadcast %cst_11 : f32 to vector<8x64xf32>
    %15 = arith.maximumf %13, %14 : vector<8x64xf32>
    %16 = arith.truncf %15 : vector<8x64xf32> to vector<8x64xbf16>
    %c0_12 = arith.constant 0 : index
    %c0_13 = arith.constant 0 : index
    %17 = vector.load %arg7[%c0_12, %c0_13] : memref<64x32xbf16, #tpu.memory_space<vmem>>, vector<64x32xbf16>
    %cst_14 = arith.constant dense<0.000000e+00> : vector<8x32xf32>
    %18 = tpu.matmul %16, %17, %cst_14 {dimension_numbers = #tpu.dot_dimension_numbers<[1], [0], [0], [1], [0, 0, 1, 1], [], []>} : vector<8x64xbf16>, vector<64x32xbf16>, vector<8x32xf32> -> vector<8x32xf32>
    %c0_15 = arith.constant 0 : index
    %c0_16 = arith.constant 0 : index
    %19 = vector.load %arg8[%c0_15, %c0_16] : memref<1x32xf32, #tpu.memory_space<vmem>>, vector<1x32xf32>
    %20 = vector.broadcast %19 : vector<1x32xf32> to vector<8x32xf32>
    %21 = arith.addf %18, %20 : vector<8x32xf32>
    %22 = vector.extract_strided_slice %21 {offsets = [0, 0], sizes = [8, 16], strides = [1, 1]} : vector<8x32xf32> to vector<8x16xf32>
    %23 = vector.extract_strided_slice %21 {offsets = [0, 16], sizes = [8, 16], strides = [1, 1]} : vector<8x32xf32> to vector<8x16xf32>
    %cst_17 = arith.constant 5.000000e-01 : f32
    %24 = vector.broadcast %cst_17 : f32 to vector<8x16xf32>
    %25 = arith.mulf %24, %23 : vector<8x16xf32>
    %26 = math.exp %25 : vector<8x16xf32>
    %c0_18 = arith.constant 0 : index
    %c0_19 = arith.constant 0 : index
    %27 = vector.load %arg2[%c0_18, %c0_19] : memref<8x16xf32, #tpu.memory_space<vmem>>, vector<8x16xf32>
    %28 = arith.mulf %26, %27 : vector<8x16xf32>
    %29 = arith.addf %28, %22 : vector<8x16xf32>
    %30 = arith.truncf %29 : vector<8x16xf32> to vector<8x16xbf16>
    %c0_20 = arith.constant 0 : index
    %c0_21 = arith.constant 0 : index
    %31 = vector.load %arg9[%c0_20, %c0_21] : memref<16x64xbf16, #tpu.memory_space<vmem>>, vector<16x64xbf16>
    %cst_22 = arith.constant dense<0.000000e+00> : vector<8x64xf32>
    %32 = tpu.matmul %30, %31, %cst_22 {dimension_numbers = #tpu.dot_dimension_numbers<[1], [0], [0], [1], [0, 0, 1, 1], [], []>} : vector<8x16xbf16>, vector<16x64xbf16>, vector<8x64xf32> -> vector<8x64xf32>
    %c0_23 = arith.constant 0 : index
    %c0_24 = arith.constant 0 : index
    %33 = vector.load %arg10[%c0_23, %c0_24] : memref<1x64xf32, #tpu.memory_space<vmem>>, vector<1x64xf32>
    %34 = vector.broadcast %33 : vector<1x64xf32> to vector<8x64xf32>
    %35 = arith.addf %32, %34 : vector<8x64xf32>
    %cst_25 = arith.constant 0.000000e+00 : f32
    %36 = vector.broadcast %cst_25 : f32 to vector<8x64xf32>
    %37 = arith.maximumf %35, %36 : vector<8x64xf32>
    %38 = arith.truncf %37 : vector<8x64xf32> to vector<8x64xbf16>
    %c0_26 = arith.constant 0 : index
    %c0_27 = arith.constant 0 : index
    %39 = vector.load %arg11[%c0_26, %c0_27] : memref<64x256xbf16, #tpu.memory_space<vmem>>, vector<64x256xbf16>
    %cst_28 = arith.constant dense<0.000000e+00> : vector<8x256xf32>
    %40 = tpu.matmul %38, %39, %cst_28 {dimension_numbers = #tpu.dot_dimension_numbers<[1], [0], [0], [1], [0, 0, 1, 1], [], []>} : vector<8x64xbf16>, vector<64x256xbf16>, vector<8x256xf32> -> vector<8x256xf32>
    %c0_29 = arith.constant 0 : index
    %c0_30 = arith.constant 0 : index
    %41 = vector.load %arg12[%c0_29, %c0_30] : memref<1x256xf32, #tpu.memory_space<vmem>>, vector<1x256xf32>
    %42 = vector.broadcast %41 : vector<1x256xf32> to vector<8x256xf32>
    %43 = arith.addf %40, %42 : vector<8x256xf32>
    %cst_31 = arith.constant 0.000000e+00 : f32
    %44 = vector.broadcast %cst_31 : f32 to vector<8x256xf32>
    %45 = arith.maximumf %43, %44 : vector<8x256xf32>
    %46 = arith.truncf %45 : vector<8x256xf32> to vector<8x256xbf16>
    %c0_32 = arith.constant 0 : index
    %c0_33 = arith.constant 0 : index
    %47 = vector.load %arg13[%c0_32, %c0_33] : memref<256x896xbf16, #tpu.memory_space<vmem>>, vector<256x896xbf16>
    %cst_34 = arith.constant dense<0.000000e+00> : vector<8x896xf32>
    %48 = tpu.matmul %46, %47, %cst_34 {dimension_numbers = #tpu.dot_dimension_numbers<[1], [0], [0], [1], [0, 0, 1, 1], [], []>} : vector<8x256xbf16>, vector<256x896xbf16>, vector<8x896xf32> -> vector<8x896xf32>
    %c0_35 = arith.constant 0 : index
    %c0_36 = arith.constant 0 : index
    %49 = vector.load %arg14[%c0_35, %c0_36] : memref<1x896xf32, #tpu.memory_space<vmem>>, vector<1x896xf32>
    %50 = vector.broadcast %49 : vector<1x896xf32> to vector<8x896xf32>
    %51 = arith.addf %48, %50 : vector<8x896xf32>
    %cst_37 = arith.constant 0.000000e+00 : f32
    %52 = vector.broadcast %cst_37 : f32 to vector<8x896xf32>
    %53 = arith.subf %52, %51 : vector<8x896xf32>
    %54 = math.exp %53 : vector<8x896xf32>
    %cst_38 = arith.constant 1.000000e+00 : f32
    %55 = vector.broadcast %cst_38 : f32 to vector<8x896xf32>
    %56 = arith.addf %55, %54 : vector<8x896xf32>
    %57 = tpu.reciprocal %56 {approx = true} : vector<8x896xf32> -> vector<8x896xf32>
    %c0_39 = arith.constant 0 : index
    %c0_40 = arith.constant 0 : index
    %58 = vector.load %arg15[%c0_39, %c0_40] : memref<8x896xf32, #tpu.memory_space<vmem>>, vector<8x896xf32>
    tpu.vector_store %arg15[%c0_39, %c0_40], %57 {strides = array<i32>} : memref<8x896xf32, #tpu.memory_space<vmem>>, vector<8x896xf32>,
    %c0_41 = arith.constant 0 : index
    %c0_42 = arith.constant 0 : index
    %59 = vector.load %arg16[%c0_41, %c0_42] : memref<8x32xf32, #tpu.memory_space<vmem>>, vector<8x32xf32>
    tpu.vector_store %arg16[%c0_41, %c0_42], %21 {strides = array<i32>} : memref<8x32xf32, #tpu.memory_space<vmem>>, vector<8x32xf32>,
    return
  }
  func.func @transform_0(%arg0: i32) -> (i32, i32) {
    %c0_i32 = arith.constant 0 : i32
    %c0_i32_0 = arith.constant 0 : i32
    return %arg0, %c0_i32 : i32, i32
  }
  func.func @transform_1(%arg0: i32) -> (i32, i32) {
    %c0_i32 = arith.constant 0 : i32
    %c0_i32_0 = arith.constant 0 : i32
    return %arg0, %c0_i32 : i32, i32
  }
  func.func @transform_2(%arg0: i32) -> (i32, i32) {
    %c0_i32 = arith.constant 0 : i32
    %c0_i32_0 = arith.constant 0 : i32
    %c0_i32_1 = arith.constant 0 : i32
    return %c0_i32, %c0_i32_0 : i32, i32
  }
  func.func @transform_3(%arg0: i32) -> (i32, i32) {
    %c0_i32 = arith.constant 0 : i32
    %c0_i32_0 = arith.constant 0 : i32
    %c0_i32_1 = arith.constant 0 : i32
    return %c0_i32, %c0_i32_0 : i32, i32
  }
  func.func @transform_4(%arg0: i32) -> (i32, i32) {
    %c0_i32 = arith.constant 0 : i32
    %c0_i32_0 = arith.constant 0 : i32
    %c0_i32_1 = arith.constant 0 : i32
    return %c0_i32, %c0_i32_0 : i32, i32
  }
  func.func @transform_5(%arg0: i32) -> (i32, i32) {
    %c0_i32 = arith.constant 0 : i32
    %c0_i32_0 = arith.constant 0 : i32
    %c0_i32_1 = arith.constant 0 : i32
    return %c0_i32, %c0_i32_0 : i32, i32
  }
  func.func @transform_6(%arg0: i32) -> (i32, i32) {
    %c0_i32 = arith.constant 0 : i32
    %c0_i32_0 = arith.constant 0 : i32
    %c0_i32_1 = arith.constant 0 : i32
    return %c0_i32, %c0_i32_0 : i32, i32
  }
  func.func @transform_7(%arg0: i32) -> (i32, i32) {
    %c0_i32 = arith.constant 0 : i32
    %c0_i32_0 = arith.constant 0 : i32
    %c0_i32_1 = arith.constant 0 : i32
    return %c0_i32, %c0_i32_0 : i32, i32
  }
  func.func @transform_8(%arg0: i32) -> (i32, i32) {
    %c0_i32 = arith.constant 0 : i32
    %c0_i32_0 = arith.constant 0 : i32
    %c0_i32_1 = arith.constant 0 : i32
    return %c0_i32, %c0_i32_0 : i32, i32
  }
  func.func @transform_9(%arg0: i32) -> (i32, i32) {
    %c0_i32 = arith.constant 0 : i32
    %c0_i32_0 = arith.constant 0 : i32
    %c0_i32_1 = arith.constant 0 : i32
    return %c0_i32, %c0_i32_0 : i32, i32
  }
  func.func @transform_10(%arg0: i32) -> (i32, i32) {
    %c0_i32 = arith.constant 0 : i32
    %c0_i32_0 = arith.constant 0 : i32
    %c0_i32_1 = arith.constant 0 : i32
    return %c0_i32, %c0_i32_0 : i32, i32
  }
  func.func @transform_11(%arg0: i32) -> (i32, i32) {
    %c0_i32 = arith.constant 0 : i32
    %c0_i32_0 = arith.constant 0 : i32
    %c0_i32_1 = arith.constant 0 : i32
    return %c0_i32, %c0_i32_0 : i32, i32
  }
  func.func @transform_12(%arg0: i32) -> (i32, i32) {
    %c0_i32 = arith.constant 0 : i32
    %c0_i32_0 = arith.constant 0 : i32
    %c0_i32_1 = arith.constant 0 : i32
    return %c0_i32, %c0_i32_0 : i32, i32
  }
  func.func @transform_13(%arg0: i32) -> (i32, i32) {
    %c0_i32 = arith.constant 0 : i32
    %c0_i32_0 = arith.constant 0 : i32
    %c0_i32_1 = arith.constant 0 : i32
    return %c0_i32, %c0_i32_0 : i32, i32
  }
  func.func @transform_14(%arg0: i32) -> (i32, i32) {
    %c0_i32 = arith.constant 0 : i32
    %c0_i32_0 = arith.constant 0 : i32
    return %arg0, %c0_i32 : i32, i32
  }
  func.func @transform_15(%arg0: i32) -> (i32, i32) {
    %c0_i32 = arith.constant 0 : i32
    %c0_i32_0 = arith.constant 0 : i32
    return %arg0, %c0_i32 : i32, i32
  }
}

</mosaic_0001>

<bundles_post_ra>
// kernel: tpu_custom_call.1
= control target key start
LH: loop header
LB: loop body
LE: loop exit
PB: predicated region body
PF: predicated region fallthrough
CT: control target
= control target key end

     0   :  { %21 = vsyncpa [#allocation3], 0  ;;  %s3498_s0 = inlined_call_operand.vmem [shape: bf16[8,896], index: 0, kind: input, shape index: {}]   ;;  %s3499_s1 = inlined_call_operand.vmem [shape: f32[8,16], index: 1, kind: input, shape index: {}]   ;;  %s3500_s2 = inlined_call_operand.hbm [shape: bf16[896,256], index: 2, kind: input, shape index: {}]   ;;  %s3501_s3 = inlined_call_operand.vmem [shape: f32[1,256], index: 3, kind: input, shape index: {}]   ;;  %s3502_s4 = inlined_call_operand.vmem [shape: bf16[256,64], index: 4, kind: input, shape index: {}]   ;;  %s3503_s5 = inlined_call_operand.vmem [shape: f32[1,64], index: 5, kind: input, shape index: {}]   ;;  %s3504_s6 = inlined_call_operand.vmem [shape: bf16[64,32], index: 6, kind: input, shape index: {}]   ;;  %s3505_s7 = inlined_call_operand.vmem [shape: f32[1,32], index: 7, kind: input, shape index: {}]   ;;  %s3506_s8 = inlined_call_operand.vmem [shape: bf16[16,64], index: 8, kind: input, shape index: {}]   ;;  %s3507_s9 = inlined_call_operand.vmem [shape: f32[1,64], index: 9, kind: input, shape index: {}]   ;;  %s3508_s10 = inlined_call_operand.vmem [shape: bf16[64,256], index: 10, kind: input, shape index: {}]   ;;  %s3509_s11 = inlined_call_operand.vmem [shape: f32[1,256], index: 11, kind: input, shape index: {}]   ;;  %s3510_s12 = inlined_call_operand.hbm [shape: bf16[256,896], index: 12, kind: input, shape index: {}]   ;;  %s3511_s13 = inlined_call_operand.vmem [shape: f32[1,896], index: 13, kind: input, shape index: {}]   ;;  %s3512_s14 = inlined_call_operand.hbm [shape: f32[8,896], index: 14, kind: output, shape index: {0}]   ;;  %s3513_s15 = inlined_call_operand.hbm [shape: f32[8,32], index: 15, kind: output, shape index: {1}]  }
   0x1   :  { %22 = vsyncpa [#allocation6], 0 }
   0x2   :  { %23 = vsyncpa [#allocation4], 0 }
   0x3   :  { %24 = vsyncpa [#allocation9], 0  ;;  %s3220_s18 = smov [#allocation2]  }
   0x4   :  { %s34_s19 = sshll.u32 %s3220_s18, 4  ;;  %s35_s19 = int_to_ptr.vmem [resolvable:$true] %s34_s19 }
   0x5   :  { %s3140_s20 = scalar_lea.vmem %s35_s19, 14336  ;;  %p3145_p1 = scmp.lt.s32.totalorder %s35_s19, %s35_s19 }
   0x6   :  { %p3141_p0 = scmp.ne.s32.totalorder %s35_s19, %s3140_s20  ;;  %p3146_p2 = scmp.lt.s32.totalorder %s3140_s20, %s3140_s20 }
   0x8   :  { %p3147_p3 = por %p3146_p2, %p3145_p1 }
   0xa   :  { %p3148_p4 = pnand %p3147_p3, %p3141_p0 }
   0xc   :  { %3151 = shalt.err (!%p3148_p4)
}
   0xd   :  { %s3221_s21 = smov 128   ;;  %s3222_s22 = smov 8  }
   0xe   :  { %40 = dma.hbm_to_vmem [thread:$0]  %s3500_s2, 14336, %s35_s19, [#allocation3], %s3221_s21, %s3221_s21, %s3222_s22  }
   0xf   :  { %s3223_s25 = smov [#allocation5]  }
  0x10   :  { %s64_s26 = sshll.u32 %s3223_s25, 4  ;;  %s65_s26 = int_to_ptr.vmem [resolvable:$true] %s64_s26 }
  0x11   :  { %s3160_s27 = scalar_lea.vmem %s65_s26, 14336  ;;  %p3165_p6 = scmp.lt.s32.totalorder %s65_s26, %s65_s26 }
  0x12   :  { %p3161_p5 = scmp.ne.s32.totalorder %s65_s26, %s3160_s27  ;;  %p3166_p7 = scmp.lt.s32.totalorder %s3160_s27, %s3160_s27 }
  0x14   :  { %p3167_p8 = por %p3166_p7, %p3165_p6 }
  0x16   :  { %p3168_p9 = pnand %p3167_p8, %p3161_p5 }
  0x18   :  { %3171 = shalt.err (!%p3168_p9)
}
  0x19   :  { %s3224_s28 = smov 448   ;;  %s3225_s29 = smov 28  }
  0x1a   :  { %70 = dma.hbm_to_vmem [thread:$0]  %s3510_s12, 14336, %s65_s26, [#allocation6], %s3224_s28, %s3224_s28, %s3225_s29  }
  0x1b   :  { %3212 = dma.done.wait [#allocation3], 14336  }
  0x1c   :  { %3213 = vsyncadd [#allocation3], 4294952960 }
  0x1d   :  { %3214 = dma.done.wait [#allocation6], 14336  }
  0x1e   :  { %3215 = vsyncadd [#allocation6], 4294952960  ;;  %v2734_v0 = vld [vmem:[#allocation2 + $0x74] ss:$8 sps:$4 sm:$0xff]   ;;  %v2736_v1 = vld [vmem:[#allocation2 + $0x70] ss:$8 sps:$4 sm:$0xff]  }
  0x1f   :  { %793 = vmatprep.subr.bf16.mxu0 %v2734_v0  ;;  %v2737_v2 = vld [vmem:[#allocation2 + $0x174] ss:$8 sps:$4 sm:$0xff]   ;;  %v2739_v3 = vld [vmem:[#allocation2 + $0x170] ss:$8 sps:$4 sm:$0xff]   ;;  %v2740_v4 = vld [vmem:[#allocation2 + $0x64] ss:$8 sps:$4 sm:$0xff]  }
  0x20   :  { %794 = vmatpush1.bf16.msra.mxu0 %v2736_v1  ;;  %v2742_v5 = vld [vmem:[#allocation2 + $0x60] ss:$8 sps:$4 sm:$0xff]   ;;  %834 = vmatprep.subr.bf16.mxu1 %v2737_v2  ;;  %v2743_v6 = vld [vmem:[#allocation2 + $0x164] ss:$8 sps:$4 sm:$0xff]   ;;  %v2746_v8 = vld [vmem:[#allocation2 + $0x54] ss:$8 sps:$4 sm:$0xff]  }
  0x21   :  { %835 = vmatpush1.bf16.msra.mxu1 %v2739_v3  ;;  %795 = vmatprep.subr.bf16.mxu0 %v2740_v4  ;;  %v2745_v7 = vld [vmem:[#allocation2 + $0x160] ss:$8 sps:$4 sm:$0xff]   ;;  %v2748_v9 = vld [vmem:[#allocation2 + $0x50] ss:$8 sps:$4 sm:$0xff]   ;;  %v2749_v10 = vld [vmem:[#allocation2 + $0x154] ss:$8 sps:$4 sm:$0xff]  }
  0x22   :  { %836 = vmatprep.subr.bf16.mxu1 %v2743_v6  ;;  %v2752_v11 = vld [vmem:[#allocation2 + $0x44] ss:$8 sps:$4 sm:$0xff]   ;;  %v2751_v12 = vld [vmem:[#allocation2 + $0x150] ss:$8 sps:$4 sm:$0xff]   ;;  %v2754_v14 = vld [vmem:[#allocation2 + $0x40] ss:$8 sps:$4 sm:$0xff]  }
  0x23   :  { %v2755_v13 = vld [vmem:[#allocation2 + $0x144] ss:$8 sps:$4 sm:$0xff]   ;;  %v2758_v15 = vld [vmem:[#allocation2 + $0x34] ss:$8 sps:$4 sm:$0xff]   ;;  %v2757_v16 = vld [vmem:[#allocation2 + $0x140] ss:$8 sps:$4 sm:$0xff]  }
  0x24   :  { %796 = vmatpush1.bf16.msra.mxu0 %v2742_v5  ;;  %v2761_v17 = vld [vmem:[#allocation2 + $0x134] ss:$8 sps:$4 sm:$0xff]   ;;  %v2760_v18 = vld [vmem:[#allocation2 + $0x30] ss:$8 sps:$4 sm:$0xff]   ;;  %v2764_v19 = vld [vmem:[#allocation2 + $0x24] ss:$8 sps:$4 sm:$0xff]  }
  0x25   :  { %797 = vmatprep.subr.bf16.mxu0 %v2746_v8  ;;  %837 = vmatpush1.bf16.msra.mxu1 %v2745_v7  ;;  %v2763_v20 = vld [vmem:[#allocation2 + $0x130] ss:$8 sps:$4 sm:$0xff]   ;;  %v2767_v21 = vld [vmem:[#allocation2 + $0x124] ss:$8 sps:$4 sm:$0xff]   ;;  %v2766_v22 = vld [vmem:[#allocation2 + $0x20] ss:$8 sps:$4 sm:$0xff]  }
  0x26   :  { %838 = vmatprep.subr.bf16.mxu1 %v2749_v10  ;;  %v2770_v23 = vld [vmem:[#allocation2 + $0x14] ss:$8 sps:$4 sm:$0xff]   ;;  %v2769_v24 = vld [vmem:[#allocation2 + $0x120] ss:$8 sps:$4 sm:$0xff]   ;;  %v2772_v26 = vld [vmem:[#allocation2 + $0x10] ss:$8 sps:$4 sm:$0xff]  }
  0x27   :  { %v2773_v25 = vld [vmem:[#allocation2 + $0x114] ss:$8 sps:$4 sm:$0xff]   ;;  %v2776_v27 = vld [vmem:[#allocation2 + $0x4] ss:$8 sps:$4 sm:$0xff]   ;;  %v2775_v28 = vld [vmem:[#allocation2 + $0x110] ss:$8 sps:$4 sm:$0xff]  }
  0x28   :  { %798 = vmatpush1.bf16.msra.mxu0 %v2748_v9  ;;  %v2779_v29 = vld [vmem:[#allocation2 + $0x104] ss:$8 sps:$4 sm:$0xff]   ;;  %v2778_v30 = vld [vmem:[#allocation2] ss:$8 sps:$4 sm:$0xff]   ;;  %v2782_v31 = vld [vmem:[#allocation2 + $0xf4] ss:$8 sps:$4 sm:$0xff]  }
  0x29   :  { %799 = vmatprep.subr.bf16.mxu0 %v2752_v11  ;;  %839 = vmatpush1.bf16.msra.mxu1 %v2751_v12  ;;  %v2781_v32 = vld [vmem:[#allocation2 + $0x100] ss:$8 sps:$4 sm:$0xff]   ;;  %v2785_v33 = vld [vmem:[#allocation2 + $0x1f4] ss:$8 sps:$4 sm:$0xff]   ;;  %v2784_v34 = vld [vmem:[#allocation2 + $0xf0] ss:$8 sps:$4 sm:$0xff]  }
  0x2a   :  { %840 = vmatprep.subr.bf16.mxu1 %v2755_v13  ;;  %v2788_v35 = vld [vmem:[#allocation2 + $0xe4] ss:$8 sps:$4 sm:$0xff]   ;;  %v2787_v36 = vld [vmem:[#allocation2 + $0x1f0] ss:$8 sps:$4 sm:$0xff]   ;;  %v2790_v38 = vld [vmem:[#allocation2 + $0xe0] ss:$8 sps:$4 sm:$0xff]  }
  0x2b   :  { %v2791_v37 = vld [vmem:[#allocation2 + $0x1e4] ss:$8 sps:$4 sm:$0xff]   ;;  %v2794_v39 = vld [vmem:[#allocation2 + $0xd4] ss:$8 sps:$4 sm:$0xff]   ;;  %v2793_v40 = vld [vmem:[#allocation2 + $0x1e0] ss:$8 sps:$4 sm:$0xff]  }
  0x2c   :  { %800 = vmatpush1.bf16.msra.mxu0 %v2754_v14  ;;  %v2797_v41 = vld [vmem:[#allocation2 + $0x1d4] ss:$8 sps:$4 sm:$0xff]   ;;  %v2796_v42 = vld [vmem:[#allocation2 + $0xd0] ss:$8 sps:$4 sm:$0xff]   ;;  %v2800_v43 = vld [vmem:[#allocation2 + $0xc4] ss:$8 sps:$4 sm:$0xff]  }
  0x2d   :  { %801 = vmatprep.subr.bf16.mxu0 %v2758_v15  ;;  %841 = vmatpush1.bf16.msra.mxu1 %v2757_v16  ;;  %v2799_v44 = vld [vmem:[#allocation2 + $0x1d0] ss:$8 sps:$4 sm:$0xff]   ;;  %v2803_v45 = vld [vmem:[#allocation2 + $0x1c4] ss:$8 sps:$4 sm:$0xff]   ;;  %v2802_v47 = vld [vmem:[#allocation2 + $0xc0] ss:$8 sps:$4 sm:$0xff]  }
  0x2e   :  { %842 = vmatprep.subr.bf16.mxu1 %v2761_v17  ;;  %v80_v46 = vld [vmem:[%s3498_s0] sm:$0xff]  ;;  %v2806_v49 = vld [vmem:[#allocation2 + $0xb4] ss:$8 sps:$4 sm:$0xff]   ;;  %v81_v50 = vld [vmem:[%s3498_s0 + $0x8] sm:$0xff]  ;;  %v3226_v15 = vmov 0   ;;  %vm3228_vm0 = vmmov 0  }
  0x2f   :  { %v2387_v48 = vcombine.high %v80_v46, %v80_v46  ;;  %v2805_v51 = vld [vmem:[#allocation2 + $0x1c0] ss:$8 sps:$4 sm:$0xff]   ;;  %v2389_v52 = vcombine.high %v81_v50, %v81_v50  ;;  %v2809_v53 = vld [vmem:[#allocation2 + $0x1b4] ss:$8 sps:$4 sm:$0xff]   ;;  %v2808_v54 = vld [vmem:[#allocation2 + $0xb0] ss:$8 sps:$4 sm:$0xff]   ;;  %v2386_v5 = vcombine.low %v80_v46, %v80_v46  ;;  %v2388_v8 = vcombine.low %v81_v50, %v81_v50 }
  0x30   :  { %802 = vmatpush1.bf16.msra.mxu0 %v2760_v18  ;;  %v2812_v55 = vld [vmem:[#allocation2 + $0xa4] ss:$8 sps:$4 sm:$0xff]   ;;  %v2811_v56 = vld [vmem:[#allocation2 + $0x1b0] ss:$8 sps:$4 sm:$0xff]   ;;  %v2814_v58 = vld [vmem:[#allocation2 + $0xa0] ss:$8 sps:$4 sm:$0xff]  }
  0x31   :  { %803 = vmatprep.subr.bf16.mxu0 %v2764_v19  ;;  %843 = vmatpush1.bf16.msra.mxu1 %v2763_v20  ;;  %v2815_v57 = vld [vmem:[#allocation2 + $0x1a4] ss:$8 sps:$4 sm:$0xff]   ;;  %v2818_v59 = vld [vmem:[#allocation2 + $0x94] ss:$8 sps:$4 sm:$0xff]   ;;  %v2817_v60 = vld [vmem:[#allocation2 + $0x1a0] ss:$8 sps:$4 sm:$0xff]  }
  0x32   :  { %844 = vmatprep.subr.bf16.mxu1 %v2767_v21  ;;  %825 = vmatprep.mubr.bf16.mxu0 %v2387_v48  ;;  %v2821_v61 = vld [vmem:[#allocation2 + $0x194] ss:$8 sps:$4 sm:$0xff]   ;;  %v2820_v62 = vld [vmem:[#allocation2 + $0x90] ss:$8 sps:$4 sm:$0xff]   ;;  %v2824_v63 = vld [vmem:[#allocation2 + $0x84] ss:$8 sps:$4 sm:$0xff]  }
  0x33   :  { %866 = vmatprep.mubr.bf16.mxu1 %v2389_v52  ;;  %v2823_v0 = vld [vmem:[#allocation2 + $0x190] ss:$8 sps:$4 sm:$0xff]   ;;  %v2827_v1 = vld [vmem:[#allocation2 + $0x184] ss:$8 sps:$4 sm:$0xff]   ;;  %v2826_v2 = vld [vmem:[#allocation2 + $0x80] ss:$8 sps:$4 sm:$0xff]  }
  0x34   :  { %804 = vmatpush1.bf16.msra.mxu0 %v2766_v22  ;;  %v2834_v3 = vld [vmem:[#allocation2 + $0x274] ss:$8 sps:$4 sm:$0xff]   ;;  %v2831_v4 = vld [vmem:[#allocation2 + $0x180] ss:$8 sps:$4 sm:$0xff]   ;;  %v2832_v7 = vld [vmem:[#allocation2 + $0x270] ss:$8 sps:$4 sm:$0xff]  }
  0x35   :  { %805 = vmatprep.subr.bf16.mxu0 %v2770_v23  ;;  %845 = vmatpush1.bf16.msra.mxu1 %v2769_v24  ;;  %v2860_v6 = vld [vmem:[#allocation2 + $0x374] ss:$8 sps:$4 sm:$0xff]   ;;  %v2839_v9 = vld [vmem:[#allocation2 + $0x264] ss:$8 sps:$4 sm:$0xff]   ;;  %v2858_v10 = vld [vmem:[#allocation2 + $0x370] ss:$8 sps:$4 sm:$0xff]  }
  0x36   :  { %846 = vmatprep.subr.bf16.mxu1 %v2773_v25  ;;  %v2866_v11 = vld [vmem:[#allocation2 + $0x364] ss:$8 sps:$4 sm:$0xff]   ;;  %v2837_v12 = vld [vmem:[#allocation2 + $0x260] ss:$8 sps:$4 sm:$0xff]   ;;  %v2842_v13 = vld [vmem:[#allocation2 + $0x254] ss:$8 sps:$4 sm:$0xff]  }
  0x37   :  { %v2864_v14 = vld [vmem:[#allocation2 + $0x360] ss:$8 sps:$4 sm:$0xff]   ;;  %v2872_v16 = vld [vmem:[#allocation2 + $0x354] ss:$8 sps:$4 sm:$0xff]   ;;  %v2840_v17 = vld [vmem:[#allocation2 + $0x250] ss:$8 sps:$4 sm:$0xff]  }
  0x38   :  { %806 = vmatpush1.bf16.msra.mxu0 %v2772_v26  ;;  %v2845_v18 = vld [vmem:[#allocation2 + $0x244] ss:$8 sps:$4 sm:$0xff]   ;;  %v2843_v19 = vld [vmem:[#allocation2 + $0x240] ss:$8 sps:$4 sm:$0xff]   ;;  %v2870_v20 = vld [vmem:[#allocation2 + $0x350] ss:$8 sps:$4 sm:$0xff]  }
  0x39   :  { %807 = vmatprep.subr.bf16.mxu0 %v2776_v27  ;;  %847 = vmatpush1.bf16.msra.mxu1 %v2775_v28  ;;  %v2878_v21 = vld [vmem:[#allocation2 + $0x344] ss:$8 sps:$4 sm:$0xff]   ;;  %v2848_v22 = vld [vmem:[#allocation2 + $0x234] ss:$8 sps:$4 sm:$0xff]   ;;  %v2876_v23 = vld [vmem:[#allocation2 + $0x340] ss:$8 sps:$4 sm:$0xff]  }
  0x3a   :  { %848 = vmatprep.subr.bf16.mxu1 %v2779_v29  ;;  %v2884_v24 = vld [vmem:[#allocation2 + $0x334] ss:$8 sps:$4 sm:$0xff]   ;;  %v2846_v26 = vld [vmem:[#allocation2 + $0x230] ss:$8 sps:$4 sm:$0xff]   ;;  %v2851_v28 = vld [vmem:[#allocation2 + $0x224] ss:$8 sps:$4 sm:$0xff]  }
  0x3b   :  { %v3329_v25 = vld [vmem:[%s3498_s0 + $0x10] sm:$0xff]  ;;  %v2881_v48 = vld [vmem:[#allocation2 + $0x2c4] ss:$8 sps:$4 sm:$0xff]   ;;  %s3229_s28 = smov 16   ;;  %vm1177_vm1 = vcmask 523264   ;;  %vm2354_vm2 = vcmask 261120  }
  0x3c   :  { %808 = vmatpush1.bf16.msra.mxu0 %v2778_v30  ;;  %v2391_v27 = vcombine.high %v3329_v25, %v3329_v25  ;;  %v2882_v29 = vld [vmem:[#allocation2 + $0x330] ss:$8 sps:$4 sm:$0xff]   ;;  %v2890_v30 = vld [vmem:[#allocation2 + $0x324] ss:$8 sps:$4 sm:$0xff]   ;;  %v2875_v46 = vld [vmem:[#allocation2 + $0x2d4] ss:$8 sps:$4 sm:$0xff]  }
  0x3d   :  { %809 = vmatprep.subr.bf16.mxu0 %v2782_v31  ;;  %849 = vmatpush1.bf16.msra.mxu1 %v2781_v32  ;;  %v2849_v31 = vld [vmem:[#allocation2 + $0x220] ss:$8 sps:$4 sm:$0xff]   ;;  %v2854_v32 = vld [vmem:[#allocation2 + $0x214] ss:$8 sps:$4 sm:$0xff]   ;;  %v2893_v52 = vld [vmem:[#allocation2 + $0x2a4] ss:$8 sps:$4 sm:$0xff]  }
  0x3e   :  { %850 = vmatprep.subr.bf16.mxu1 %v2785_v33  ;;  %v2888_v33 = vld [vmem:[#allocation2 + $0x320] ss:$8 sps:$4 sm:$0xff]   ;;  %v2887_v50 = vld [vmem:[#allocation2 + $0x2b4] ss:$8 sps:$4 sm:$0xff]   ;;  %vm1254_vm3 = vcmask 130048  }
  0x40   :  { %810 = vmatpush2.bf16.msra.mxu0 %v2784_v34  ;;  %v2896_v34 = vld [vmem:[#allocation2 + $0x314] ss:$8 sps:$4 sm:$0xff]  }
  0x41   :  { %811 = vmatprep.subr.bf16.mxu0 %v2788_v35  ;;  %851 = vmatpush2.bf16.msra.mxu1 %v2787_v36  ;;  %v2852_v35 = vld [vmem:[#allocation2 + $0x210] ss:$8 sps:$4 sm:$0xff]   ;;  %v2857_v36 = vld [vmem:[#allocation2 + $0x204] ss:$8 sps:$4 sm:$0xff]  }
  0x42   :  { %852 = vmatprep.subr.bf16.mxu1 %v2791_v37  ;;  %v2894_v37 = vld [vmem:[#allocation2 + $0x310] ss:$8 sps:$4 sm:$0xff]  }
  0x44   :  { %812 = vmatpush2.bf16.msra.mxu0 %v2790_v38  ;;  %v2902_v38 = vld [vmem:[#allocation2 + $0x304] ss:$8 sps:$4 sm:$0xff]  }
  0x45   :  { %813 = vmatprep.subr.bf16.mxu0 %v2794_v39  ;;  %853 = vmatpush2.bf16.msra.mxu1 %v2793_v40  ;;  %v2855_v39 = vld [vmem:[#allocation2 + $0x200] ss:$8 sps:$4 sm:$0xff]   ;;  %v2863_v40 = vld [vmem:[#allocation2 + $0x2f4] ss:$8 sps:$4 sm:$0xff]  }
  0x46   :  { %854 = vmatprep.subr.bf16.mxu1 %v2797_v41  ;;  %v2900_v41 = vld [vmem:[#allocation2 + $0x300] ss:$8 sps:$4 sm:$0xff]  }
  0x48   :  { %814 = vmatpush2.bf16.msra.mxu0 %v2796_v42  ;;  %v2861_v42 = vld [vmem:[#allocation2 + $0x2f0] ss:$8 sps:$4 sm:$0xff]  }
  0x49   :  { %815 = vmatprep.subr.bf16.mxu0 %v2800_v43  ;;  %855 = vmatpush2.bf16.msra.mxu1 %v2799_v44  ;;  %v2869_v43 = vld [vmem:[#allocation2 + $0x2e4] ss:$8 sps:$4 sm:$0xff]   ;;  %v2906_v44 = vld [vmem:[%s3498_s0 + $0x18] ss:$0 sps:$4 sm:$0xff]  }
  0x4a   :  { %856 = vmatprep.subr.bf16.mxu1 %v2803_v45  ;;  %v2867_v45 = vld [vmem:[#allocation2 + $0x2e0] ss:$8 sps:$4 sm:$0xff]  }
  0x4c   :  { %816 = vmatpush2.bf16.msra.mxu0 %v2802_v47  ;;  %v2873_v47 = vld [vmem:[#allocation2 + $0x2d0] ss:$8 sps:$4 sm:$0xff]  }
  0x4d   :  { %817 = vmatprep.subr.bf16.mxu0 %v2806_v49  ;;  %857 = vmatpush2.bf16.msra.mxu1 %v2805_v51  ;;  %v2879_v49 = vld [vmem:[#allocation2 + $0x2c0] ss:$8 sps:$4 sm:$0xff]   ;;  %v2885_v51 = vld [vmem:[#allocation2 + $0x2b0] ss:$8 sps:$4 sm:$0xff]  }
  0x4e   :  { %858 = vmatprep.subr.bf16.mxu1 %v2809_v53  ;;  %v2891_v53 = vld [vmem:[#allocation2 + $0x2a0] ss:$8 sps:$4 sm:$0xff]  }
  0x50   :  { %818 = vmatpush2.bf16.msra.mxu0 %v2808_v54  ;;  %v2899_v54 = vld [vmem:[#allocation2 + $0x294] ss:$8 sps:$4 sm:$0xff]  }
  0x51   :  { %819 = vmatprep.subr.bf16.mxu0 %v2812_v55  ;;  %859 = vmatpush2.bf16.msra.mxu1 %v2811_v56  ;;  %v2897_v55 = vld [vmem:[#allocation2 + $0x290] ss:$8 sps:$4 sm:$0xff]   ;;  %v2905_v56 = vld [vmem:[#allocation2 + $0x284] ss:$8 sps:$4 sm:$0xff]  }
  0x52   :  { %860 = vmatprep.subr.bf16.mxu1 %v2815_v57  ;;  %v2903_v57 = vld [vmem:[#allocation2 + $0x280] ss:$8 sps:$4 sm:$0xff]  }
  0x54   :  { %820 = vmatpush2.bf16.msra.mxu0 %v2814_v58  ;;  %v2390_v58 = vcombine.low %v3329_v25, %v3329_v25  ;;  %v198_v25 = vlaneseq }
  0x55   :  { %821 = vmatprep.subr.bf16.mxu0 %v2818_v59  ;;  %861 = vmatpush2.bf16.msra.mxu1 %v2817_v60  ;;  %v2909_v59 = vld [vmem:[%s3502_s4 + $0x78] sm:$0xff]  }
  0x56   :  { %862 = vmatprep.subr.bf16.mxu1 %v2821_v61  ;;  %v2910_v60 = vld [vmem:[%s3502_s4 + $0x38] sm:$0xff]   ;;  %v2911_v61 = vld [vmem:[%s3502_s4 + $0x70] sm:$0xff]  }
  0x58   :  { %822 = vmatpush2.bf16.msra.mxu0 %v2820_v62  ;;  %v2912_v62 = vld [vmem:[%s3502_s4 + $0x30] sm:$0xff]  }
  0x59   :  { %823 = vmatprep.subr.bf16.mxu0 %v2824_v63  ;;  %863 = vmatpush2.bf16.msra.mxu1 %v2823_v0  ;;  %v2913_v63 = vld [vmem:[%s3502_s4 + $0x68] sm:$0xff]  }
  0x5a   :  { %864 = vmatprep.subr.bf16.mxu1 %v2827_v1  ;;  %v2914_v0 = vld [vmem:[%s3502_s4 + $0x28] sm:$0xff]   ;;  %v2915_v1 = vld [vmem:[%s3502_s4 + $0x60] sm:$0xff]  }
  0x5c   :  { %824 = vmatpush2.bf16.msra.mxu0 %v2826_v2  ;;  %v2916_v2 = vld [vmem:[%s3502_s4 + $0x20] sm:$0xff]  }
  0x5d   :  { %875 = vmatprep.subr.bf16.mxu0 %v2834_v3  ;;  %865 = vmatpush2.bf16.msra.mxu1 %v2831_v4  ;;  %v2917_v3 = vld [vmem:[%s3502_s4 + $0x58] sm:$0xff]  }
  0x5e   :  { %916 = vmatprep.subr.bf16.mxu1 %v2860_v6  ;;  %v2918_v4 = vld [vmem:[%s3502_s4 + $0x18] sm:$0xff]   ;;  %v2920_v6 = vld [vmem:[%s3502_s4 + $0x10] sm:$0xff]  }
  0x5f   :  { %826 = vmatmul.mubr.bf16.vlgmr.msra.gmra.mxu0 %v2386_v5  ;;  %v2919_v5 = vld [vmem:[%s3502_s4 + $0x50] sm:$0xff]  }
  0x60   :  { %876 = vmatpush1.bf16.msra.mxu0 %v2832_v7  ;;  %867 = vmatmul.mubr.bf16.vlgmr.msra.gmra.mxu1 %v2388_v8  ;;  %v2921_v7 = vld [vmem:[%s3502_s4 + $0x48] sm:$0xff]  }
  0x61   :  { %877 = vmatprep.subr.bf16.mxu0 %v2839_v9  ;;  %917 = vmatpush1.bf16.msra.mxu1 %v2858_v10  ;;  %v2922_v8 = vld [vmem:[%s3502_s4 + $0x8] sm:$0xff]   ;;  %v2923_v9 = vld [vmem:[%s3502_s4 + $0x40] sm:$0xff]  }
  0x62   :  { %948 = vmatprep.mubr.bf16.mxu1 %v3226_v15  ;;  %918 = vmatprep.subr.bf16.mxu1 %v2866_v11  ;;  %v2924_v10 = vld [vmem:[%s3502_s4] sm:$0xff]   ;;  %v3227_v11 = vmov 0.0  }
  0x63   :  { %907 = vmatprep.mubr.bf16.mxu0 %v2391_v27 }
  0x64   :  { %878 = vmatpush1.bf16.msra.mxu0 %v2837_v12 }
  0x65   :  { %879 = vmatprep.subr.bf16.mxu0 %v2842_v13  ;;  %919 = vmatpush1.bf16.msra.mxu1 %v2864_v14 }
  0x66   :  { %920 = vmatprep.subr.bf16.mxu1 %v2872_v16 }
  0x68   :  { %880 = vmatpush1.bf16.msra.mxu0 %v2840_v17 }
  0x69   :  { %881 = vmatprep.subr.bf16.mxu0 %v2845_v18  ;;  %921 = vmatpush1.bf16.msra.mxu1 %v2870_v20 }
  0x6a   :  { %922 = vmatprep.subr.bf16.mxu1 %v2878_v21 }
  0x6c   :  { %882 = vmatpush1.bf16.msra.mxu0 %v2843_v19 }
  0x6d   :  { %883 = vmatprep.subr.bf16.mxu0 %v2848_v22  ;;  %923 = vmatpush1.bf16.msra.mxu1 %v2876_v23 }
  0x6e   :  { %924 = vmatprep.subr.bf16.mxu1 %v2884_v24 }
  0x70   :  { %884 = vmatpush1.bf16.msra.mxu0 %v2846_v26  ;;  %v3387_v26 = vshrl.u32 %v198_v25, 7  ;;  %v2950_v25 = vld [vmem:[#allocation5 + $0x154] ss:$28 sps:$4 sm:$0xff]  }
  0x71   :  { %885 = vmatprep.subr.bf16.mxu0 %v2851_v28  ;;  %925 = vmatpush1.bf16.msra.mxu1 %v2882_v29  ;;  %v196_v28 = vld [vmem:[%s3501_s3] sm:$0x3] }
  0x72   :  { %926 = vmatprep.subr.bf16.mxu1 %v2890_v30  ;;  %v3390_v27 = vsub.s32 0, %v3387_v26  ;;  %v3396_v29 = vsub.s32 1, %v3387_v26 }
  0x74   :  { %886 = vmatpush1.bf16.msra.mxu0 %v2849_v31  ;;  %v201_v30 = vrot.slane %v196_v28, %v3390_v27  ;;  %v205_v31 = vrot.slane %v196_v28, %v3396_v29  ;;  %v2948_v28 = vld [vmem:[#allocation5 + $0x150] ss:$28 sps:$4 sm:$0xff]  }
  0x75   :  { %887 = vmatprep.subr.bf16.mxu0 %v2854_v32  ;;  %927 = vmatpush1.bf16.msra.mxu1 %v2888_v33 }
  0x76   :  { %928 = vmatprep.subr.bf16.mxu1 %v2896_v34 }
  0x78   :  { %888 = vmatpush1.bf16.msra.mxu0 %v2852_v35 }
  0x79   :  { %889 = vmatprep.subr.bf16.mxu0 %v2857_v36  ;;  %929 = vmatpush1.bf16.msra.mxu1 %v2894_v37 }
  0x7a   :  { %930 = vmatprep.subr.bf16.mxu1 %v2902_v38 }
  0x7c   :  { %890 = vmatpush1.bf16.msra.mxu0 %v2855_v39 }
  0x7d   :  { %891 = vmatprep.subr.bf16.mxu0 %v2863_v40  ;;  %931 = vmatpush1.bf16.msra.mxu1 %v2900_v41 }
  0x7e   :  { %2652 = vmatprep.subr.bf16.mxu1 %v2909_v59 }
  0x80   :  { %892 = vmatpush2.bf16.msra.mxu0 %v2861_v42  ;;  %949 = vmatmul.mubr.bf16.vlgmr.msra.gmra.mxu1 %v2906_v44 }
  0x81   :  { %893 = vmatprep.subr.bf16.mxu0 %v2869_v43  ;;  %2653 = vmatpush3.bf16.msra.mxu1 %v2910_v60 }
  0x82   :  { %2654 = vmatprep.subr.bf16.mxu1 %v2911_v61 }
  0x84   :  { %894 = vmatpush2.bf16.msra.mxu0 %v2867_v45 }
  0x85   :  { %895 = vmatprep.subr.bf16.mxu0 %v2875_v46  ;;  %2655 = vmatpush3.bf16.msra.mxu1 %v2912_v62  ;;  %v2929_v62 = vld [vmem:[%s3506_s8] sm:$0xff]  }
  0x86   :  { %2656 = vmatprep.subr.bf16.mxu1 %v2913_v63  ;;  %v2522_v63 = vld [vmem:[%s3505_s7] ss:$0 sm:$0xff]  ;;  %s3230_s7 = smov 112  }
  0x88   :  { %896 = vmatpush2.bf16.msra.mxu0 %v2873_v47  ;;  %v2925_v47 = vld [vmem:[%s3504_s6 + $0x18] sm:$0xff]  }
  0x89   :  { %897 = vmatprep.subr.bf16.mxu0 %v2881_v48  ;;  %2657 = vmatpush3.bf16.msra.mxu1 %v2914_v0 }
  0x8a   :  { %2658 = vmatprep.subr.bf16.mxu1 %v2915_v1 }
  0x8c   :  { %898 = vmatpush2.bf16.msra.mxu0 %v2879_v49  ;;  %v2926_v49 = vld [vmem:[%s3504_s6 + $0x10] sm:$0xff]  }
  0x8d   :  { %899 = vmatprep.subr.bf16.mxu0 %v2887_v50  ;;  %2659 = vmatpush3.bf16.msra.mxu1 %v2916_v2  ;;  %v2927_v50 = vld [vmem:[%s3504_s6 + $0x8] sm:$0xff]  }
  0x8e   :  { %2660 = vmatprep.subr.bf16.mxu1 %v2917_v3 }
  0x90   :  { %900 = vmatpush2.bf16.msra.mxu0 %v2885_v51  ;;  %v2928_v51 = vld [vmem:[%s3504_s6] sm:$0xff]  }
  0x91   :  { %901 = vmatprep.subr.bf16.mxu0 %v2893_v52  ;;  %2661 = vmatpush3.bf16.msra.mxu1 %v2918_v4  ;;  %v1224_v52 = vld [vmem:[%s3499_s1] sm:$0xff] }
  0x92   :  { %2662 = vmatprep.subr.bf16.mxu1 %v2919_v5  ;;  %1226 = vrot.lane.b32.xlu0 %v1224_v52, %s3229_s28  ;;  %v3022_v52 = vld [vmem:[#allocation5 + $0x234] ss:$28 sps:$4 sm:$0xff]  }
  0x94   :  { %902 = vmatpush2.bf16.msra.mxu0 %v2891_v53 }
  0x95   :  { %903 = vmatprep.subr.bf16.mxu0 %v2899_v54  ;;  %2663 = vmatpush3.bf16.msra.mxu1 %v2920_v6  ;;  %v2505_v54 = vld [vmem:[%s3503_s5] ss:$0 sm:$0xff] }
  0x96   :  { %2664 = vmatprep.subr.bf16.mxu1 %v2921_v7  ;;  %v2932_v7 = vld [vmem:[%s3508_s10 + $0x34] ss:$8 sps:$4 sm:$0xff]  }
  0x98   :  { %904 = vmatpush2.bf16.msra.mxu0 %v2897_v55 }
  0x99   :  { %905 = vmatprep.subr.bf16.mxu0 %v2905_v56  ;;  %2665 = vmatpush3.bf16.msra.mxu1 %v2922_v8 }
  0x9a   :  { %2666 = vmatprep.subr.bf16.mxu1 %v2923_v9 }
  0x9c   :  { %906 = vmatpush2.bf16.msra.mxu0 %v2903_v57 }
  0x9d   :  { %2667 = vmatpush3.bf16.msra.mxu1 %v2924_v10 }
  0x9e   :  { %2703 = vmatprep.subr.bf16.mxu1 %v3227_v11 }
  0x9f   :  { %908 = vmatmul.mubr.bf16.vlgmr.msra.gmra.mxu0 %v2390_v58 }
 0x104   :  { %v1227_v9 = vpop.permute.xlu0 %1226 }
 0x11f   :  { %v827_v12 = vpop.f32.mrf.mxu0 }
 0x120   :  { %v868_v14 = vpop.f32.mrf.mxu1  ;;  %v828_v32 = vadd.f32 %v827_v12, %v201_v30  ;;  %v2956_v30 = vld [vmem:[#allocation5 + $0x11c] ss:$28 sps:$4 sm:$0xff]  }
 0x121   :  { %v829_v13 = vpop.f32.mrf.mxu0 }
 0x122   :  { %v870_v17 = vpop.f32.mrf.mxu1  ;;  %v830_v33 = vadd.f32 %v829_v13, %v205_v31  ;;  %v869_v34 = vadd.f32 %v868_v14, %v828_v32  ;;  %v2930_v14 = vld [vmem:[%s3508_s10 + $0x30] ss:$8 sps:$4 sm:$0xff]   ;;  %v2962_v32 = vld [vmem:[#allocation5 + $0xe4] ss:$28 sps:$4 sm:$0xff]  }
 0x123   :  { %v831_v16 = vpop.f32.mrf.mxu0  ;;  %v2954_v31 = vld [vmem:[#allocation5 + $0x118] ss:$28 sps:$4 sm:$0xff]  }
 0x124   :  { %v872_v19 = vpop.f32.mrf.mxu1  ;;  %v871_v36 = vadd.f32 %v870_v17, %v830_v33  ;;  %v2935_v16 = vld [vmem:[%s3508_s10 + $0x24] ss:$8 sps:$4 sm:$0xff]   ;;  %v2960_v33 = vld [vmem:[#allocation5 + $0xe0] ss:$28 sps:$4 sm:$0xff]  }
 0x125   :  { %v832_v18 = vpop.f32.mrf.mxu0  ;;  %v2938_v19 = vld [vmem:[%s3508_s10 + $0x14] ss:$8 sps:$4 sm:$0xff]  }
 0x126   :  { %v873_v20 = vpop.f32.mrf.mxu1  ;;  %v2933_v18 = vld [vmem:[%s3508_s10 + $0x20] ss:$8 sps:$4 sm:$0xff]  }
 0x127   :  { %v2936_v20 = vld [vmem:[%s3508_s10 + $0x10] ss:$8 sps:$4 sm:$0xff]  }
 0x140   :  { %v950_v21 = vpop.f32.mrf.mxu1 }
 0x142   :  { %v952_v22 = vpop.f32.mrf.mxu1 }
 0x144   :  { %v954_v23 = vpop.f32.mrf.mxu1 }
 0x145   :  { %v2944_v23 = vld [vmem:[#allocation5 + $0x18c] ss:$28 sps:$4 sm:$0xff]  }
 0x146   :  { %v955_v24 = vpop.f32.mrf.mxu1  ;;  %2149 = vmatprep.subr.bf16.mxu0 %v2944_v23  ;;  %v3025_v23 = vld [vmem:[#allocation5 + $0x23c] ss:$28 sps:$4 sm:$0xff]  }
 0x147   :  { %v2947_v24 = vld [vmem:[#allocation5 + $0x194] ss:$28 sps:$4 sm:$0xff]  }
 0x15f   :  { %v909_v35 = vpop.f32.mrf.mxu0 }
 0x160   :  { %v910_v37 = vadd.f32 %v909_v35, %v869_v34  ;;  %v2968_v34 = vld [vmem:[#allocation5 + $0xac] ss:$28 sps:$4 sm:$0xff]  }
 0x161   :  { %v911_v38 = vpop.f32.mrf.mxu0  ;;  %v2966_v35 = vld [vmem:[#allocation5 + $0xa8] ss:$28 sps:$4 sm:$0xff]  }
 0x162   :  { %v951_v39 = vadd.f32 %v950_v21, %v910_v37  ;;  %v912_v40 = vadd.f32 %v911_v38, %v871_v36  ;;  %v2941_v21 = vld [vmem:[%s3508_s10 + $0x4] ss:$8 sps:$4 sm:$0xff]   ;;  %v2974_v36 = vld [vmem:[#allocation5 + $0x74] ss:$28 sps:$4 sm:$0xff]   ;;  %v2980_v38 = vld [vmem:[#allocation5 + $0x3c] ss:$28 sps:$4 sm:$0xff]  }
 0x163   :  { %v913_v41 = vpop.f32.mrf.mxu0  ;;  %v2972_v37 = vld [vmem:[#allocation5 + $0x70] ss:$28 sps:$4 sm:$0xff]  }
 0x164   :  { %v953_v42 = vadd.f32 %v952_v22, %v912_v40  ;;  %v957_v43 = vmax.f32 %v951_v39, 0.0  ;;  %v2942_v22 = vld [vmem:[#allocation5 + $0x188] ss:$28 sps:$4 sm:$0xff]   ;;  %v2978_v39 = vld [vmem:[#allocation5 + $0x38] ss:$28 sps:$4 sm:$0xff]  }
 0x165   :  { %v914_v44 = vpop.f32.mrf.mxu0  ;;  %2150 = vmatpush1.bf16.msra.mxu0 %v2942_v22  ;;  %v2986_v40 = vld [vmem:[#allocation5 + $0x4] ss:$28 sps:$4 sm:$0xff]   ;;  %v3017_v22 = vld [vmem:[#allocation5 + $0x270] ss:$28 sps:$4 sm:$0xff]  }
 0x166   :  { %v958_v45 = vmax.f32 %v953_v42, 0.0  ;;  %v959_v48 = vpack.c.bf16 %v957_v43, %v957_v43  ;;  %2151 = vmatprep.subr.bf16.mxu0 %v2950_v25  ;;  %v2984_v41 = vld [vmem:[#allocation5] ss:$28 sps:$4 sm:$0xff]   ;;  %v2992_v42 = vld [vmem:[#allocation5 + $0x34c] ss:$28 sps:$4 sm:$0xff]  }
 0x167   :  { %v2990_v43 = vld [vmem:[#allocation5 + $0x348] ss:$28 sps:$4 sm:$0xff]   ;;  %v2998_v44 = vld [vmem:[#allocation5 + $0x314] ss:$28 sps:$4 sm:$0xff]   ;;  %v3028_v25 = vld [vmem:[#allocation5 + $0x1fc] ss:$28 sps:$4 sm:$0xff]  }
 0x168   :  { %v960_v46 = vpack.c.bf16 %v958_v45, %v958_v45  ;;  %v2996_v45 = vld [vmem:[#allocation5 + $0x310] ss:$28 sps:$4 sm:$0xff]  }
 0x169   :  { %2152 = vmatpush1.bf16.msra.mxu0 %v2948_v28  ;;  %v3031_v28 = vld [vmem:[#allocation5 + $0x204] ss:$28 sps:$4 sm:$0xff]  }
 0x16a   :  { %1128 = vmatprep.mubr.bf16.mxu1 %v960_v46  ;;  %2153 = vmatprep.subr.bf16.mxu0 %v2956_v30  ;;  %v3004_v46 = vld [vmem:[#allocation5 + $0x2dc] ss:$28 sps:$4 sm:$0xff]  }
 0x16b   :  { %1129 = vmatmul.mubr.bf16.vlgmr.msra.gmra.mxu1 %v959_v48  ;;  %v3010_v48 = vld [vmem:[#allocation5 + $0x2a4] ss:$28 sps:$4 sm:$0xff]   ;;  %v3026_v30 = vld [vmem:[#allocation5 + $0x1f8] ss:$28 sps:$4 sm:$0xff]  }
 0x16c   :  { %2704 = vmatpush3.bf16.msra.mxu1 %v2925_v47  ;;  %2711 = vmatprep.mubr.msk.bf16.mxu1 %vm3228_vm0, %v3227_v11  ;;  %v3002_v47 = vld [vmem:[#allocation5 + $0x2d8] ss:$28 sps:$4 sm:$0xff]  }
 0x16d   :  { %2705 = vmatprep.subr.bf16.mxu1 %v3227_v11  ;;  %2154 = vmatpush1.bf16.msra.mxu0 %v2954_v31  ;;  %v3029_v31 = vld [vmem:[#allocation5 + $0x200] ss:$28 sps:$4 sm:$0xff]  }
 0x16e   :  { %2155 = vmatprep.subr.bf16.mxu0 %v2962_v32  ;;  %v3034_v32 = vld [vmem:[#allocation5 + $0x1c4] ss:$28 sps:$4 sm:$0xff]  }
 0x170   :  { %2706 = vmatpush3.bf16.msra.mxu1 %v2926_v49  ;;  %v3008_v49 = vld [vmem:[#allocation5 + $0x2a0] ss:$28 sps:$4 sm:$0xff]  }
 0x171   :  { %2707 = vmatprep.subr.bf16.mxu1 %v3227_v11  ;;  %2156 = vmatpush1.bf16.msra.mxu0 %v2960_v33  ;;  %v3037_v33 = vld [vmem:[#allocation5 + $0x1cc] ss:$28 sps:$4 sm:$0xff]  }
 0x172   :  { %2157 = vmatprep.subr.bf16.mxu0 %v2968_v34  ;;  %v3032_v34 = vld [vmem:[#allocation5 + $0x1c0] ss:$28 sps:$4 sm:$0xff]  }
 0x174   :  { %2708 = vmatpush3.bf16.msra.mxu1 %v2927_v50  ;;  %v3016_v50 = vld [vmem:[#allocation5 + $0x26c] ss:$28 sps:$4 sm:$0xff]  }
 0x175   :  { %2709 = vmatprep.subr.bf16.mxu1 %v3227_v11  ;;  %2158 = vmatpush1.bf16.msra.mxu0 %v2966_v35  ;;  %v3035_v35 = vld [vmem:[#allocation5 + $0x1c8] ss:$28 sps:$4 sm:$0xff]  }
 0x176   :  { %2159 = vmatprep.subr.bf16.mxu0 %v2974_v36  ;;  %v3040_v36 = vld [vmem:[#allocation5 + $0x19c] ss:$28 sps:$4 sm:$0xff]  }
 0x178   :  { %2710 = vmatpush3.bf16.msra.mxu1 %v2928_v51  ;;  %v3014_v51 = vld [vmem:[#allocation5 + $0x268] ss:$28 sps:$4 sm:$0xff]  }
 0x179   :  { %2715 = vmatprep.subr.bf16.mxu1 %v3227_v11  ;;  %2160 = vmatpush1.bf16.msra.mxu0 %v2972_v37  ;;  %v3041_v37 = vld [vmem:[#allocation5 + $0x360] ss:$28 sps:$4 sm:$0xff]  }
 0x17a   :  { %2161 = vmatprep.subr.bf16.mxu0 %v2980_v38  ;;  %v1308_v38 = vld [vmem:[%s3509_s11] sm:$0x3]  ;;  %s3231_s11 = smov [#allocation8]  }
 0x17b   :  { %s2372_s29 = sshll.u32 %s3231_s11, 4  ;;  %s2373_s29 = int_to_ptr.vmem [resolvable:$true] %s2372_s29 }
 0x17c   :  { %s3172_s30 = scalar_lea.vmem %s2373_s29, 128  ;;  %p3177_p11 = scmp.lt.s32.totalorder %s2373_s29, %s2373_s29 }
 0x17d   :  { %2162 = vmatpush1.bf16.msra.mxu0 %v2978_v39  ;;  %v1313_v39 = vrot.slane %v1308_v38, %v3390_v27  ;;  %p3173_p10 = scmp.ne.s32.totalorder %s2373_s29, %s3172_s30  ;;  %p3178_p12 = scmp.lt.s32.totalorder %s3172_s30, %s3172_s30 }
 0x17e   :  { %2163 = vmatprep.subr.bf16.mxu0 %v2986_v40  ;;  %v1317_v40 = vrot.slane %v1308_v38, %v3396_v29 }
 0x17f   :  { %p3179_p13 = por %p3178_p12, %p3177_p11 }
 0x181   :  { %2164 = vmatpush1.bf16.msra.mxu0 %v2984_v41  ;;  %p3180_p0 = pnand %p3179_p13, %p3173_p10 }
 0x182   :  { %2165 = vmatprep.subr.bf16.mxu0 %v2992_v42 }
 0x185   :  { %2166 = vmatpush2.bf16.msra.mxu0 %v2990_v43 }
 0x186   :  { %2167 = vmatprep.subr.bf16.mxu0 %v2998_v44 }
 0x189   :  { %2168 = vmatpush2.bf16.msra.mxu0 %v2996_v45 }
 0x18a   :  { %2169 = vmatprep.subr.bf16.mxu0 %v3004_v46 }
 0x18d   :  { %2170 = vmatpush2.bf16.msra.mxu0 %v3002_v47 }
 0x18e   :  { %2171 = vmatprep.subr.bf16.mxu0 %v3010_v48 }
 0x191   :  { %2172 = vmatpush2.bf16.msra.mxu0 %v3008_v49 }
 0x192   :  { %2173 = vmatprep.subr.bf16.mxu0 %v3016_v50  ;;  %v3038_v50 = vld [vmem:[#allocation5 + $0x198] ss:$28 sps:$4 sm:$0xff]  }
 0x195   :  { %2174 = vmatpush2.bf16.msra.mxu0 %v3014_v51  ;;  %v3042_v51 = vld [vmem:[#allocation5 + $0x1a0] ss:$28 sps:$4 sm:$0xff]  }
 0x196   :  { %2175 = vmatprep.subr.bf16.mxu0 %v3022_v52 }
 0x22b   :  { %v2668_v53 = vpop.f32.mrf.mxu1 }
 0x22d   :  { %v2669_v55 = vpop.f32.mrf.mxu1 }
 0x22e   :  { %v2670_v56 = vadd.f32 %v2669_v55, %v2668_v53  ;;  %v3020_v53 = vld [vmem:[#allocation5 + $0x230] ss:$28 sps:$4 sm:$0xff]  }
 0x22f   :  { %v2671_v57 = vpop.f32.mrf.mxu1  ;;  %2176 = vmatpush2.bf16.msra.mxu0 %v3020_v53  ;;  %v3045_v53 = vld [vmem:[#allocation5 + $0x164] ss:$28 sps:$4 sm:$0xff]  }
 0x230   :  { %v1131_v58 = vadd.f32 %v2670_v56, %v2505_v54  ;;  %v2528_v54 = vld [vmem:[%s3507_s9] ss:$0 sm:$0xff]  ;;  %2177 = vmatprep.subr.bf16.mxu0 %v3028_v25  ;;  %v3092_v25 = vld [vmem:[#allocation5 + $0x27c] ss:$28 sps:$4 sm:$0xff]  }
 0x231   :  { %v2672_v59 = vpop.f32.mrf.mxu1 }
 0x232   :  { %v1136_v60 = vmax.f32 %v1131_v58, 0.0 }
 0x233   :  { %2178 = vmatpush2.bf16.msra.mxu0 %v3026_v30  ;;  %v3095_v30 = vld [vmem:[#allocation5 + $0x244] ss:$28 sps:$4 sm:$0xff]  }
 0x234   :  { %v1137_v61 = vpack.c.bf16 %v1136_v60, %v1136_v60  ;;  %v2945_v60 = vld [vmem:[#allocation5 + $0x190] ss:$28 sps:$4 sm:$0xff]   ;;  %2179 = vmatprep.subr.bf16.mxu0 %v3034_v32 }
 0x235   :  { %v3098_v32 = vld [vmem:[#allocation5 + $0x20c] ss:$28 sps:$4 sm:$0xff]  }
 0x236   :  { %2712 = vmatmul.mubr.msk.bf16.vlgmr.msra.gmra.mxu1 %vm1177_vm1, %v1137_v61 }
 0x237   :  { %2717 = vmatprep.mubr.msk.bf16.mxu1 %vm3228_vm0, %v3227_v11  ;;  %2716 = vmatpush3.bf16.msra.mxu1 %v2929_v62  ;;  %v2953_v62 = vld [vmem:[#allocation5 + $0x15c] ss:$28 sps:$4 sm:$0xff]  }
 0x238   :  { %1371 = vmatprep.subr.bf16.mxu1 %v2932_v7  ;;  %v2977_v7 = vld [vmem:[#allocation5 + $0x7c] ss:$28 sps:$4 sm:$0xff]   ;;  %2180 = vmatpush2.bf16.msra.mxu0 %v3032_v34  ;;  %v3101_v34 = vld [vmem:[#allocation5 + $0x1d4] ss:$28 sps:$4 sm:$0xff]  }
 0x239   :  { %2231 = vmatprep.subr.bf16.mxu0 %v3040_v36 }
 0x2f6   :  { %v1215_v0 = vpop.f32.mrf.mxu1 }
 0x2f7   :  { %v1216_v1 = vadd.f32 %v2522_v63, %v1215_v0  ;;  %v2951_v0 = vld [vmem:[#allocation5 + $0x158] ss:$28 sps:$4 sm:$0xff]  }
 0x2f8   :  { %v2713_v2 = vpop.f32.mrf.mxu1 }
 0x2f9   :  { %1231 = vrot.lane.b32.xlu0 %v1216_v1, %s3229_s28  ;;  %2355 = vst.msk [vmem:[#allocation8] sm:$0xff] %vm2354_vm2, %v1216_v1  ;;  %v1221_v5 = vmul.f32 0.5, %v1216_v1  ;;  %v2959_v1 = vld [vmem:[#allocation5 + $0x124] ss:$28 sps:$4 sm:$0xff]  }
 0x2fa   :  { %v1218_v3 = vpop.f32.mrf.mxu1  ;;  %v2957_v2 = vld [vmem:[#allocation5 + $0x120] ss:$28 sps:$4 sm:$0xff]  }
 0x2fb   :  { %v1222_v6 = vmul.f32 1.442695, %v1221_v5  ;;  %v2965_v3 = vld [vmem:[#allocation5 + $0xec] ss:$28 sps:$4 sm:$0xff]   ;;  %v2971_v5 = vld [vmem:[#allocation5 + $0xb4] ss:$28 sps:$4 sm:$0xff]  }
 0x2fc   :  { %v2714_v4 = vpop.f32.mrf.mxu1 }
 0x2fd   :  { %3102 = vpow2.f32 %v1222_v6  ;;  %v2963_v4 = vld [vmem:[#allocation5 + $0xe8] ss:$28 sps:$4 sm:$0xff]   ;;  %v2969_v6 = vld [vmem:[#allocation5 + $0xb0] ss:$28 sps:$4 sm:$0xff]  }
 0x30a   :  { %v3103_v8 = vpop.eup %3102 }
 0x30b   :  { %v1229_v10 = vmul.f32 %v3103_v8, %v1227_v9  ;;  %v2975_v8 = vld [vmem:[#allocation5 + $0x78] ss:$28 sps:$4 sm:$0xff]   ;;  %v2983_v9 = vld [vmem:[#allocation5 + $0x44] ss:$28 sps:$4 sm:$0xff]  }
 0x36b   :  { %v1232_v11 = vpop.permute.xlu0 %1231 }
 0x36c   :  { %v1234_v12 = vadd.f32 %v1232_v11, %v1229_v10  ;;  %v2981_v10 = vld [vmem:[#allocation5 + $0x40] ss:$28 sps:$4 sm:$0xff]   ;;  %v2989_v11 = vld [vmem:[#allocation5 + $0xc] ss:$28 sps:$4 sm:$0xff]  }
 0x36e   :  { %v1235_v13 = vpack.c.bf16 %v1234_v12, %v1234_v12  ;;  %v2987_v12 = vld [vmem:[#allocation5 + $0x8] ss:$28 sps:$4 sm:$0xff]  }
 0x370   :  { %1246 = vrot.lane.b32.xlu1 %v1235_v13, %s3230_s7  ;;  %v2995_v13 = vld [vmem:[#allocation5 + $0x354] ss:$28 sps:$4 sm:$0xff]  }
 0x3e2   :  { %v1247_v17 = vpop.permute.xlu1 %1246 }
 0x3e3   :  { %2718 = vmatmul.mubr.msk.bf16.vlgmr.msra.gmra.mxu1 %vm1254_vm3, %v1247_v17  ;;  %v2999_v17 = vld [vmem:[#allocation5 + $0x318] ss:$28 sps:$4 sm:$0xff]  }
 0x3e4   :  { %1372 = vmatpush1.bf16.msra.mxu1 %v2930_v14  ;;  %1395 = vmatprep.mubr.bf16.mxu1 %v3226_v15  ;;  %v2939_v15 = vld [vmem:[%s3508_s10] ss:$8 sps:$4 sm:$0xff]   ;;  %v2993_v14 = vld [vmem:[#allocation5 + $0x350] ss:$28 sps:$4 sm:$0xff]  }
 0x3e5   :  { %1373 = vmatprep.subr.bf16.mxu1 %v2935_v16  ;;  %v3001_v16 = vld [vmem:[#allocation5 + $0x31c] ss:$28 sps:$4 sm:$0xff]  }
 0x3e8   :  { %1374 = vmatpush1.bf16.msra.mxu1 %v2933_v18  ;;  %v3007_v18 = vld [vmem:[#allocation5 + $0x2e4] ss:$28 sps:$4 sm:$0xff]  }
 0x3e9   :  { %1375 = vmatprep.subr.bf16.mxu1 %v2938_v19  ;;  %v3005_v19 = vld [vmem:[#allocation5 + $0x2e0] ss:$28 sps:$4 sm:$0xff]  }
 0x3ec   :  { %1376 = vmatpush1.bf16.msra.mxu1 %v2936_v20  ;;  %v3013_v20 = vld [vmem:[#allocation5 + $0x2ac] ss:$28 sps:$4 sm:$0xff]  }
 0x3ed   :  { %1377 = vmatprep.subr.bf16.mxu1 %v2941_v21  ;;  %v3011_v21 = vld [vmem:[#allocation5 + $0x2a8] ss:$28 sps:$4 sm:$0xff]  }
 0x3f0   :  { %1378 = vmatpush1.bf16.msra.mxu1 %v2939_v15  ;;  %v3019_v15 = vld [vmem:[#allocation5 + $0x274] ss:$28 sps:$4 sm:$0xff]  }
 0x3f1   :  { %2190 = vmatprep.subr.bf16.mxu1 %v2947_v24  ;;  %v3023_v24 = vld [vmem:[#allocation5 + $0x238] ss:$28 sps:$4 sm:$0xff]  }
 0x4a3   :  { %v1292_v55 = vpop.f32.mrf.mxu1 }
 0x4a4   :  { %v1293_v56 = vadd.f32 %v2528_v54, %v1292_v55  ;;  %v3046_v54 = vld [vmem:[#allocation5 + $0x328] ss:$28 sps:$4 sm:$0xff]   ;;  %v3043_v55 = vld [vmem:[#allocation5 + $0x160] ss:$28 sps:$4 sm:$0xff]  }
 0x4a5   :  { %v2719_v57 = vpop.f32.mrf.mxu1 }
 0x4a6   :  { %v1298_v58 = vmax.f32 %v1293_v56, 0.0  ;;  %v3047_v56 = vld [vmem:[#allocation5 + $0x168] ss:$28 sps:$4 sm:$0xff]  }
 0x4a7   :  { %v1295_v59 = vpop.f32.mrf.mxu1  ;;  %v3050_v57 = vld [vmem:[#allocation5 + $0x12c] ss:$28 sps:$4 sm:$0xff]  }
 0x4a8   :  { %v1299_v61 = vpack.c.bf16 %v1298_v58, %v1298_v58  ;;  %v3051_v58 = vld [vmem:[#allocation5 + $0x2f0] ss:$28 sps:$4 sm:$0xff]   ;;  %v3048_v59 = vld [vmem:[#allocation5 + $0x128] ss:$28 sps:$4 sm:$0xff]  }
 0x4a9   :  { %v2720_v63 = vpop.f32.mrf.mxu1 }
 0x4aa   :  { %2539 = vmatmul.mubr.msk.bf16.vlgmr.msra.gmra.mxu1 %vm1177_vm1, %v1299_v61  ;;  %v3055_v61 = vld [vmem:[#allocation5 + $0xf4] ss:$28 sps:$4 sm:$0xff]  }
 0x4ab   :  { %2191 = vmatpush1.bf16.msra.mxu1 %v2945_v60  ;;  %v3052_v60 = vld [vmem:[#allocation5 + $0x130] ss:$28 sps:$4 sm:$0xff]  }
 0x4ac   :  { %2192 = vmatprep.subr.bf16.mxu1 %v2953_v62  ;;  %v3056_v62 = vld [vmem:[#allocation5 + $0x2b8] ss:$28 sps:$4 sm:$0xff]   ;;  %v3053_v63 = vld [vmem:[#allocation5 + $0xf0] ss:$28 sps:$4 sm:$0xff]  }
 0x4af   :  { %2193 = vmatpush1.bf16.msra.mxu1 %v2951_v0  ;;  %v3057_v0 = vld [vmem:[#allocation5 + $0xf8] ss:$28 sps:$4 sm:$0xff]  }
 0x4b0   :  { %2194 = vmatprep.subr.bf16.mxu1 %v2959_v1  ;;  %v3060_v1 = vld [vmem:[#allocation5 + $0xbc] ss:$28 sps:$4 sm:$0xff]  }
 0x4b3   :  { %2195 = vmatpush1.bf16.msra.mxu1 %v2957_v2  ;;  %v3061_v2 = vld [vmem:[#allocation5 + $0x280] ss:$28 sps:$4 sm:$0xff]  }
 0x4b4   :  { %2196 = vmatprep.subr.bf16.mxu1 %v2965_v3  ;;  %v3058_v3 = vld [vmem:[#allocation5 + $0xb8] ss:$28 sps:$4 sm:$0xff]  }
 0x4b7   :  { %2197 = vmatpush1.bf16.msra.mxu1 %v2963_v4  ;;  %v3062_v4 = vld [vmem:[#allocation5 + $0xc0] ss:$28 sps:$4 sm:$0xff]  }
 0x4b8   :  { %2198 = vmatprep.subr.bf16.mxu1 %v2971_v5  ;;  %v3065_v5 = vld [vmem:[#allocation5 + $0x84] ss:$28 sps:$4 sm:$0xff]  }
 0x4bb   :  { %2199 = vmatpush1.bf16.msra.mxu1 %v2969_v6  ;;  %v3066_v6 = vld [vmem:[#allocation5 + $0x248] ss:$28 sps:$4 sm:$0xff]  }
 0x4bc   :  { %2200 = vmatprep.subr.bf16.mxu1 %v2977_v7  ;;  %v3063_v7 = vld [vmem:[#allocation5 + $0x80] ss:$28 sps:$4 sm:$0xff]  }
 0x4bf   :  { %2201 = vmatpush1.bf16.msra.mxu1 %v2975_v8  ;;  %v3067_v8 = vld [vmem:[#allocation5 + $0x88] ss:$28 sps:$4 sm:$0xff]  }
 0x4c0   :  { %2202 = vmatprep.subr.bf16.mxu1 %v2983_v9  ;;  %v3070_v9 = vld [vmem:[#allocation5 + $0x4c] ss:$28 sps:$4 sm:$0xff]  }
 0x4c3   :  { %2203 = vmatpush1.bf16.msra.mxu1 %v2981_v10  ;;  %v3071_v10 = vld [vmem:[#allocation5 + $0x210] ss:$28 sps:$4 sm:$0xff]  }
 0x4c4   :  { %2204 = vmatprep.subr.bf16.mxu1 %v2989_v11  ;;  %v3068_v11 = vld [vmem:[#allocation5 + $0x48] ss:$28 sps:$4 sm:$0xff]  }
 0x4c7   :  { %2205 = vmatpush1.bf16.msra.mxu1 %v2987_v12  ;;  %v3072_v12 = vld [vmem:[#allocation5 + $0x50] ss:$28 sps:$4 sm:$0xff]  }
 0x4c8   :  { %2206 = vmatprep.subr.bf16.mxu1 %v2995_v13  ;;  %v3075_v13 = vld [vmem:[#allocation5 + $0x14] ss:$28 sps:$4 sm:$0xff]  }
 0x4cb   :  { %2207 = vmatpush2.bf16.msra.mxu1 %v2993_v14  ;;  %v3076_v14 = vld [vmem:[#allocation5 + $0x1d8] ss:$28 sps:$4 sm:$0xff]  }
 0x4cc   :  { %2208 = vmatprep.subr.bf16.mxu1 %v3001_v16  ;;  %v3073_v16 = vld [vmem:[#allocation5 + $0x10] ss:$28 sps:$4 sm:$0xff]  }
 0x4cf   :  { %2209 = vmatpush2.bf16.msra.mxu1 %v2999_v17  ;;  %v3077_v17 = vld [vmem:[#allocation5 + $0x18] ss:$28 sps:$4 sm:$0xff]  }
 0x4d0   :  { %2210 = vmatprep.subr.bf16.mxu1 %v3007_v18  ;;  %v3080_v18 = vld [vmem:[#allocation5 + $0x35c] ss:$28 sps:$4 sm:$0xff]  }
 0x4d3   :  { %2211 = vmatpush2.bf16.msra.mxu1 %v3005_v19  ;;  %v3078_v19 = vld [vmem:[#allocation5 + $0x358] ss:$28 sps:$4 sm:$0xff]  }
 0x4d4   :  { %2212 = vmatprep.subr.bf16.mxu1 %v3013_v20  ;;  %v3083_v20 = vld [vmem:[#allocation5 + $0x324] ss:$28 sps:$4 sm:$0xff]  }
 0x4d7   :  { %2213 = vmatpush2.bf16.msra.mxu1 %v3011_v21  ;;  %v3081_v21 = vld [vmem:[#allocation5 + $0x320] ss:$28 sps:$4 sm:$0xff]  }
 0x4d8   :  { %2214 = vmatprep.subr.bf16.mxu1 %v3019_v15  ;;  %v3086_v15 = vld [vmem:[#allocation5 + $0x2ec] ss:$28 sps:$4 sm:$0xff]  }
 0x4db   :  { %2215 = vmatpush2.bf16.msra.mxu1 %v3017_v22  ;;  %v3084_v22 = vld [vmem:[#allocation5 + $0x2e8] ss:$28 sps:$4 sm:$0xff]  }
 0x4dc   :  { %2216 = vmatprep.subr.bf16.mxu1 %v3025_v23  ;;  %v3089_v23 = vld [vmem:[#allocation5 + $0x2b4] ss:$28 sps:$4 sm:$0xff]  }
 0x4df   :  { %2217 = vmatpush2.bf16.msra.mxu1 %v3023_v24  ;;  %v3087_v24 = vld [vmem:[#allocation5 + $0x2b0] ss:$28 sps:$4 sm:$0xff]  }
 0x4e0   :  { %2218 = vmatprep.subr.bf16.mxu1 %v3031_v28  ;;  %v3090_v28 = vld [vmem:[#allocation5 + $0x278] ss:$28 sps:$4 sm:$0xff]  }
 0x4e3   :  { %2219 = vmatpush2.bf16.msra.mxu1 %v3029_v31  ;;  %v3093_v31 = vld [vmem:[#allocation5 + $0x240] ss:$28 sps:$4 sm:$0xff]  }
 0x4e4   :  { %2220 = vmatprep.subr.bf16.mxu1 %v3037_v33  ;;  %v3096_v33 = vld [vmem:[#allocation5 + $0x208] ss:$28 sps:$4 sm:$0xff]  }
 0x4e7   :  { %2221 = vmatpush2.bf16.msra.mxu1 %v3035_v35  ;;  %v3099_v35 = vld [vmem:[#allocation5 + $0x1d0] ss:$28 sps:$4 sm:$0xff]  }
 0x4e8   :  { %2681 = vmatprep.subr.bf16.mxu1 %v3041_v37 }
 0x56a   :  { %v1397_v41 = vpop.f32.mrf.mxu1 }
 0x56b   :  { %v1398_v42 = vadd.f32 %v1397_v41, %v1313_v39 }
 0x56c   :  { %v1399_v43 = vpop.f32.mrf.mxu1 }
 0x56d   :  { %v1400_v44 = vadd.f32 %v1399_v43, %v1317_v40  ;;  %v1404_v45 = vmax.f32 %v1398_v42, 0.0 }
 0x56e   :  { %v1401_v46 = vpop.f32.mrf.mxu1 }
 0x56f   :  { %v1405_v47 = vmax.f32 %v1400_v44, 0.0  ;;  %v3467_v52 = vpack.c.bf16 %v1404_v45, %v1404_v45 }
 0x570   :  { %v1402_v48 = vpop.f32.mrf.mxu1 }
 0x571   :  { %v1407_v49 = vpack.c.bf16 %v1405_v47, %v1405_v47 }
 0x573   :  { %2181 = vmatprep.mubr.bf16.mxu0 %v1407_v49  ;;  %2222 = vmatprep.mubr.bf16.mxu1 %v1407_v49 }
 0x574   :  { %2182 = vmatmul.mubr.bf16.vlgmr.msra.gmra.mxu0 %v3467_v52  ;;  %2223 = vmatmul.mubr.bf16.vlgmr.msra.gmra.mxu1 %v3467_v52 }
 0x575   :  { %2232 = vmatpush1.bf16.msra.mxu0 %v3038_v50  ;;  %2682 = vmatpush3.bf16.msra.mxu1 %v3042_v51 }
 0x576   :  { %2263 = vmatprep.mubr.bf16.mxu0 %v1407_v49  ;;  %2304 = vmatprep.mubr.bf16.mxu1 %v1407_v49 }
 0x577   :  { %2233 = vmatprep.subr.bf16.mxu0 %v3045_v53  ;;  %2683 = vmatprep.subr.bf16.mxu1 %v3046_v54 }
 0x579   :  { %2234 = vmatpush1.bf16.msra.mxu0 %v3043_v55  ;;  %2684 = vmatpush3.bf16.msra.mxu1 %v3047_v56 }
 0x57a   :  { %2235 = vmatprep.subr.bf16.mxu0 %v3050_v57  ;;  %2685 = vmatprep.subr.bf16.mxu1 %v3051_v58 }
 0x57d   :  { %2236 = vmatpush1.bf16.msra.mxu0 %v3048_v59  ;;  %2686 = vmatpush3.bf16.msra.mxu1 %v3052_v60 }
 0x57e   :  { %2237 = vmatprep.subr.bf16.mxu0 %v3055_v61  ;;  %2687 = vmatprep.subr.bf16.mxu1 %v3056_v62 }
 0x581   :  { %2238 = vmatpush1.bf16.msra.mxu0 %v3053_v63  ;;  %2688 = vmatpush3.bf16.msra.mxu1 %v3057_v0 }
 0x582   :  { %2239 = vmatprep.subr.bf16.mxu0 %v3060_v1  ;;  %2689 = vmatprep.subr.bf16.mxu1 %v3061_v2 }
 0x585   :  { %2240 = vmatpush1.bf16.msra.mxu0 %v3058_v3  ;;  %2690 = vmatpush3.bf16.msra.mxu1 %v3062_v4 }
 0x586   :  { %2241 = vmatprep.subr.bf16.mxu0 %v3065_v5  ;;  %2691 = vmatprep.subr.bf16.mxu1 %v3066_v6 }
 0x589   :  { %2242 = vmatpush1.bf16.msra.mxu0 %v3063_v7  ;;  %2692 = vmatpush3.bf16.msra.mxu1 %v3067_v8 }
 0x58a   :  { %2243 = vmatprep.subr.bf16.mxu0 %v3070_v9  ;;  %2693 = vmatprep.subr.bf16.mxu1 %v3071_v10 }
 0x58d   :  { %2244 = vmatpush1.bf16.msra.mxu0 %v3068_v11  ;;  %2694 = vmatpush3.bf16.msra.mxu1 %v3072_v12 }
 0x58e   :  { %2245 = vmatprep.subr.bf16.mxu0 %v3075_v13  ;;  %2695 = vmatprep.subr.bf16.mxu1 %v3076_v14 }
 0x591   :  { %2246 = vmatpush1.bf16.msra.mxu0 %v3073_v16  ;;  %2696 = vmatpush3.bf16.msra.mxu1 %v3077_v17 }
 0x592   :  { %2247 = vmatprep.subr.bf16.mxu0 %v3080_v18 }
 0x594   :  { %2305 = vmatmul.mubr.bf16.vlgmr.msra.gmra.mxu1 %v3467_v52 }
 0x595   :  { %2248 = vmatpush2.bf16.msra.mxu0 %v3078_v19 }
 0x596   :  { %2249 = vmatprep.subr.bf16.mxu0 %v3083_v20 }
 0x599   :  { %2250 = vmatpush2.bf16.msra.mxu0 %v3081_v21 }
 0x59a   :  { %2251 = vmatprep.subr.bf16.mxu0 %v3086_v15 }
 0x59d   :  { %2252 = vmatpush2.bf16.msra.mxu0 %v3084_v22 }
 0x59e   :  { %2253 = vmatprep.subr.bf16.mxu0 %v3089_v23 }
 0x5a1   :  { %2254 = vmatpush2.bf16.msra.mxu0 %v3087_v24 }
 0x5a2   :  { %2255 = vmatprep.subr.bf16.mxu0 %v3092_v25 }
 0x5a5   :  { %2256 = vmatpush2.bf16.msra.mxu0 %v3090_v28 }
 0x5a6   :  { %2257 = vmatprep.subr.bf16.mxu0 %v3095_v30 }
 0x5a9   :  { %2258 = vmatpush2.bf16.msra.mxu0 %v3093_v31 }
 0x5aa   :  { %2259 = vmatprep.subr.bf16.mxu0 %v3098_v32 }
 0x5ad   :  { %2260 = vmatpush2.bf16.msra.mxu0 %v3096_v33 }
 0x5ae   :  { %2261 = vmatprep.subr.bf16.mxu0 %v3101_v34 }
 0x5b1   :  { %2262 = vmatpush2.bf16.msra.mxu0 %v3099_v35 }
 0x5b4   :  { %2264 = vmatmul.mubr.bf16.vlgmr.msra.gmra.mxu0 %v3467_v52 }
 0x5b5   :  { %3183 = shalt.err (!%p3180_p0)
}
 0x5b6   :  { %2375 = dma.vmem_to_hbm [thread:$0]  %s2373_s29, 128, %s3513_s15, [#allocation9]   ;;  %v1548_v36 = vsub.s32 2, %v3387_v26  ;;  %v3480_v37 = vld [vmem:[%s3511_s13] sm:$0xff]  ;;  %v1552_v38 = vsub.s32 3, %v3387_v26  ;;  %v1564_v5 = vsub.s32 6, %v3387_v26 }
 0x5b7   :  { %v1541_v39 = vrot.slane %v3480_v37, %v3390_v27  ;;  %v1545_v41 = vrot.slane %v3480_v37, %v3396_v29  ;;  %v1556_v15 = vsub.s32 4, %v3387_v26  ;;  %v1560_v22 = vsub.s32 5, %v3387_v26  ;;  %s3232_s13 = smov [#allocation7]  }
 0x5b8   :  { %v1549_v40 = vrot.slane %v3480_v37, %v1548_v36  ;;  %v1553_v42 = vrot.slane %v3480_v37, %v1552_v38  ;;  %v1565_v7 = vrot.slane %v3480_v37, %v1564_v5  ;;  %s2362_s15 = sshll.u32 %s3232_s13, 4  ;;  %s2363_s15 = int_to_ptr.vmem [resolvable:$true] %s2362_s15 }
 0x5b9   :  { %v1557_v23 = vrot.slane %v3480_v37, %v1556_v15  ;;  %v1561_v24 = vrot.slane %v3480_v37, %v1560_v22  ;;  %s3192_s2 = scalar_lea.vmem %s2363_s15, 896  ;;  %p3197_p2 = scmp.lt.s32.totalorder %s2363_s15, %s2363_s15 }
 0x5ba   :  { %p3193_p1 = scmp.ne.s32.totalorder %s2363_s15, %s3192_s2  ;;  %p3198_p3 = scmp.lt.s32.totalorder %s3192_s2, %s3192_s2 }
 0x5bc   :  { %p3199_p4 = por %p3198_p3, %p3197_p2 }
 0x5be   :  { %p3200_p5 = pnand %p3199_p4, %p3193_p1 }
 0x634   :  { %v2183_v43 = vpop.f32.mrf.mxu0  ;;  %v2224_v44 = vpop.f32.mrf.mxu1 }
 0x635   :  { %v2184_v45 = vadd.f32 %v2183_v43, %v1541_v39  ;;  %v2225_v46 = vadd.f32 %v2224_v44, %v1549_v40 }
 0x636   :  { %v2185_v47 = vpop.f32.mrf.mxu0  ;;  %v2226_v48 = vpop.f32.mrf.mxu1 }
 0x637   :  { %v2312_v49 = vsub.f32 0.0, %v2184_v45  ;;  %v2314_v50 = vsub.f32 0.0, %v2225_v46  ;;  %v2186_v51 = vadd.f32 %v2185_v47, %v1545_v41  ;;  %v2227_v52 = vadd.f32 %v2226_v48, %v1553_v42 }
 0x638   :  { %v2187_v53 = vpop.f32.mrf.mxu0  ;;  %v2228_v54 = vpop.f32.mrf.mxu1 }
 0x639   :  { %v2319_v27 = vmul.f32 1.442695, %v2312_v49  ;;  %v2323_v55 = vmul.f32 1.442695, %v2314_v50  ;;  %v2313_v56 = vsub.f32 0.0, %v2186_v51  ;;  %v2315_v57 = vsub.f32 0.0, %v2227_v52 }
 0x63a   :  { %v2188_v58 = vpop.f32.mrf.mxu0  ;;  %v2229_v29 = vpop.f32.mrf.mxu1 }
 0x63b   :  { %3104 = vpow2.f32 %v2319_v27  ;;  %v2321_v59 = vmul.f32 1.442695, %v2313_v56  ;;  %v2325_v60 = vmul.f32 1.442695, %v2315_v57 }
 0x63c   :  { %3106 = vpow2.f32 %v2323_v55 }
 0x63d   :  { %3108 = vpow2.f32 %v2321_v59 }
 0x63e   :  { %3110 = vpow2.f32 %v2325_v60 }
 0x648   :  { %v3105_v61 = vpop.eup %3104 }
 0x649   :  { %v3107_v62 = vpop.eup %3106  ;;  %v2333_v63 = vadd.f32 1.0, %v3105_v61 }
 0x64a   :  { %v3109_v0 = vpop.eup %3108  ;;  %v2335_v1 = vadd.f32 1.0, %v3107_v62 }
 0x64b   :  { %v3111_v2 = vpop.eup %3110  ;;  %3112 = vrcp.f32 %v2333_v63  ;;  %v2334_v3 = vadd.f32 1.0, %v3109_v0 }
 0x64c   :  { %3114 = vrcp.f32 %v2335_v1  ;;  %v2336_v4 = vadd.f32 1.0, %v3111_v2 }
 0x64d   :  { %3116 = vrcp.f32 %v2334_v3 }
 0x64e   :  { %3118 = vrcp.f32 %v2336_v4 }
 0x654   :  { %v2697_v6 = vpop.f32.mrf.mxu1 }
 0x656   :  { %v2698_v8 = vpop.f32.mrf.mxu1 }
 0x657   :  { %v2699_v9 = vadd.f32 %v2698_v8, %v2697_v6 }
 0x658   :  { %v3113_v10 = vpop.eup %3112  ;;  %v2700_v11 = vpop.f32.mrf.mxu1 }
 0x659   :  { %v3115_v12 = vpop.eup %3114  ;;  %2347 = vst [vmem:[#allocation7] sm:$0xff] %v3113_v10  ;;  %v2307_v13 = vadd.f32 %v2699_v9, %v1565_v7 }
 0x65a   :  { %v3117_v14 = vpop.eup %3116  ;;  %2349 = vst [vmem:[#allocation7 + $0x10] sm:$0xff] %v3115_v12  ;;  %v2701_v16 = vpop.f32.mrf.mxu1 }
 0x65b   :  { %v3119_v17 = vpop.eup %3118  ;;  %2348 = vst [vmem:[#allocation7 + $0x8] sm:$0xff] %v3117_v14  ;;  %v2318_v18 = vsub.f32 0.0, %v2307_v13 }
 0x65c   :  { %2350 = vst [vmem:[#allocation7 + $0x18] sm:$0xff] %v3119_v17 }
 0x65d   :  { %v2331_v19 = vmul.f32 1.442695, %v2318_v18 }
 0x65f   :  { %3120 = vpow2.f32 %v2331_v19 }
 0x66c   :  { %v3121_v20 = vpop.eup %3120 }
 0x66d   :  { %v2339_v21 = vadd.f32 1.0, %v3121_v20 }
 0x66f   :  { %3122 = vrcp.f32 %v2339_v21 }
 0x674   :  { %v2265_v25 = vpop.f32.mrf.mxu0 }
 0x675   :  { %v2266_v28 = vadd.f32 %v2265_v25, %v1557_v23 }
 0x676   :  { %v2267_v30 = vpop.f32.mrf.mxu0 }
 0x677   :  { %v2316_v31 = vsub.f32 0.0, %v2266_v28  ;;  %v2268_v32 = vadd.f32 %v2267_v30, %v1561_v24 }
 0x678   :  { %v2269_v33 = vpop.f32.mrf.mxu0 }
 0x679   :  { %v2327_v34 = vmul.f32 1.442695, %v2316_v31  ;;  %v2317_v35 = vsub.f32 0.0, %v2268_v32 }
 0x67a   :  { %v2270_v36 = vpop.f32.mrf.mxu0 }
 0x67b   :  { %3124 = vpow2.f32 %v2327_v34  ;;  %v2329_v38 = vmul.f32 1.442695, %v2317_v35 }
 0x67c   :  { %v3123_v39 = vpop.eup %3122 }
 0x67d   :  { %2353 = vst [vmem:[#allocation7 + $0x30] sm:$0xff] %v3123_v39  ;;  %3126 = vpow2.f32 %v2329_v38 }
 0x688   :  { %v3125_v40 = vpop.eup %3124 }
 0x689   :  { %v2337_v26 = vadd.f32 1.0, %v3125_v40 }
 0x68a   :  { %v3127_v41 = vpop.eup %3126 }
 0x68b   :  { %3128 = vrcp.f32 %v2337_v26  ;;  %v2338_v42 = vadd.f32 1.0, %v3127_v41 }
 0x68d   :  { %3130 = vrcp.f32 %v2338_v42 }
 0x698   :  { %v3129_v37 = vpop.eup %3128 }
 0x699   :  { %2351 = vst [vmem:[#allocation7 + $0x20] sm:$0xff] %v3129_v37 }
 0x69a   :  { %v3131_v43 = vpop.eup %3130 }
 0x69b   :  { %2352 = vst [vmem:[#allocation7 + $0x28] sm:$0xff] %v3131_v43 }
 0x69c   :  { %3203 = shalt.err (!%p3200_p5)
}
 0x69d   :  { %2365 = dma.vmem_to_hbm [thread:$0]  %s2363_s15, 896, %s3512_s14, [#allocation4]  }
 0x69e   :  { %3216 = dma.done.wait [#allocation4], 896  }
 0x69f   :  { %3217 = vsyncadd [#allocation4], 4294966400 }
 0x6a0   :  { %3218 = dma.done.wait [#allocation9], 128  }
 0x6a1   :  { %3219 = vsyncadd [#allocation9], 4294967168 }
 0x6a2   :  { %2382 = vsyncpa [#allocation3], 1 }
 0x6a3   :  { %2383 = vsyncpa [#allocation6], 1 }
 0x6a4   :  { %2384 = vsyncpa [#allocation4], 1 }
 0x6a5   :  { %2385 = vsyncpa [#allocation9], 1 }

</bundles_post_ra>
